<compile_context>
chip_gen: v7x
topology: tpu7x:2x2x1
jax: 0.10.0
libtpu: 0.0.40
codegen_flags: <defaults>
</compile_context>

<pallas_src>
import functools

import jax
import jax.numpy as jnp
from jax import lax
from jax.experimental import pallas as pl
from jax.experimental.pallas import tpu as pltpu


def _round_up(x, m):
    return (x + m - 1) // m * m


# -----------------------------------------------------------------------------
# Kernel: grid = (batch_tiles, time_chunks). One time chunk per inner grid step;
# recurrent state persists in VMEM scratch across time chunks (per batch tile).
# -----------------------------------------------------------------------------
def lstm_pinn_kernel(
    x_ref,       # (Tt*Bt, Din)   current time chunk, rows ordered (t, b)
    wih0_ref,    # (Din, 4H)      layer-0 input weights (dense gate packing)
    whh0_ref,    # (H,   4H)      layer-0 recurrent weights
    b0_ref,      # (1,   4H)      layer-0 combined bias (b_ih + b_hh)
    w1s_ref,     # (2H,  4H)      layer-1 stacked [W_ih1; W_hh1]
    b1_ref,      # (1,   4H)      layer-1 combined bias
    wf1_ref,     # (H,   H)       fc[0] weight^T
    bf1_ref,     # (1,   H)
    wf2_ref,     # (H,   Doutp)   fc[2] weight^T (out cols zero-padded to 128)
    bf2_ref,     # (1,   Doutp)
    out_ref,     # (Tt*Bt, Doutp)
    h0_s, c0_s, h1_s, c1_s,   # VMEM (Bt, H): persistent recurrent state
    xw0_scr,     # VMEM (Tt*Bt, 4H): hoisted layer-0 input gates for the chunk
    h1hist,      # VMEM (Tt*Bt, H):  per-step h1 for the FC head
    *, h, bt, tt, unroll,
):
    H, Bt, Tt = h, bt, tt

    # Zero-init state at the start of each batch tile's time sweep (time id == 0).
    @pl.when(pl.program_id(1) == 0)
    def _init():
        h0_s[...] = jnp.zeros_like(h0_s)
        c0_s[...] = jnp.zeros_like(c0_s)
        h1_s[...] = jnp.zeros_like(h1_s)
        c1_s[...] = jnp.zeros_like(c1_s)

    # Hoisted layer-0 input projection: one tall MXU matmul per chunk.
    xw0_scr[...] = (
        jnp.dot(x_ref[...], wih0_ref[...], preferred_element_type=jnp.float32)
        + b0_ref[...]
    )

    # Loop-invariant operands hoisted out of the recurrence.
    b1_full = jnp.broadcast_to(b1_ref[...], (Bt, 4 * H))
    whh0 = whh0_ref[...]
    w1s = w1s_ref[...]

    def gates_to_hc(g, c_prev):
        # PyTorch gate order i, f, g, o; gates densely packed (no 128-lane pad).
        i_g = jax.nn.sigmoid(g[:, 0:H])
        f_g = jax.nn.sigmoid(g[:, H:2 * H])
        g_g = jnp.tanh(g[:, 2 * H:3 * H])
        o_g = jax.nn.sigmoid(g[:, 3 * H:4 * H])
        c_new = f_g * c_prev + i_g * g_g
        h_new = o_g * jnp.tanh(c_new)
        return h_new, c_new

    def step(i, carry):
        h0, c0, h1, c1 = carry                    # state lives in vregs
        row = pl.multiple_of(i * Bt, Bt)

        # layer 0: input contribution precomputed; only the recurrent matmul here
        g0 = xw0_scr[pl.ds(row, Bt), :] + jnp.dot(
            h0, whh0, preferred_element_type=jnp.float32)
        h0, c0 = gates_to_hc(g0, c0)

        # layer 1: fused [h0_new | h1_prev] @ [W_ih1; W_hh1], LHS built in registers
        lhs1 = jnp.concatenate([h0, h1], axis=-1)
        g1 = jnp.dot(lhs1, w1s, preferred_element_type=jnp.float32) + b1_full
        h1, c1 = gates_to_hc(g1, c1)

        h1hist[pl.ds(row, Bt), :] = h1            # history for the FC head
        return (h0, c0, h1, c1)

    carry0 = (h0_s[...], c0_s[...], h1_s[...], c1_s[...])
    h0, c0, h1, c1 = lax.fori_loop(0, Tt, step, carry0, unroll=unroll)

    # Persist state for the next time chunk (once per chunk, off the step path).
    h0_s[...] = h0
    c0_s[...] = c0
    h1_s[...] = h1
    c1_s[...] = c1

    # FC head on the whole chunk: two tall matmuls + one lane-dense bulk store.
    z = jnp.tanh(
        jnp.dot(h1hist[...], wf1_ref[...], preferred_element_type=jnp.float32)
        + bf1_ref[...]
    )
    out_ref[...] = (
        jnp.dot(z, wf2_ref[...], preferred_element_type=jnp.float32) + bf2_ref[...]
    )


# -----------------------------------------------------------------------------
# Wrapper: padding, weight re-layout, grid over (batch tiles, time chunks).
# -----------------------------------------------------------------------------
def lstm_pinn_forward(x, params, hidden_dim, *, time_chunk=None, batch_tile=None):
    """x: (B, T, in_dim) batch-first, like the PyTorch module. Returns (B, T, out_dim)."""
    (wih0, whh0, b0, wih1, whh1, b1, wf1, bf1, wf2, bf2) = params
    B, T, Din = x.shape
    H = hidden_dim
    Dout = wf2.shape[1]
    f32 = jnp.float32

    Doutp = _round_up(Dout, 128)            # lane-dense output store

    # Batch tiling: sublane-aligned; split into 2 tiles when large enough so the
    # "parallel" grid axis can shard the recurrence across v7x's 2 TensorCores.
    B8 = _round_up(B, 8)
    if batch_tile is None:
        batch_tile = B8 if B8 <= 8 else _round_up((B8 + 1) // 2, 8)
    Bt = _round_up(batch_tile, 8)
    Bp = _round_up(B, Bt)
    n_bt = Bp // Bt

    # VMEM-budget-aware time chunk (keeps chunk scratch well under v7x's VMEM).
    per_step_bytes = 4 * Bt * (4 * H + H + 2 * Din + 2 * Doutp)
    if time_chunk is None:
        budget = 24 << 20
        time_chunk = max(1, min(T, 256, budget // per_step_bytes))
    Tt = min(time_chunk, T)
    Tp = _round_up(T, Tt)
    n_chunks = Tp // Tt

    # Weights: dense gate packing (4H columns), only the output padded to 128 lanes.
    wih0p = wih0.astype(f32)
    whh0p = whh0.astype(f32)
    b0p = b0.astype(f32)
    w1s = jnp.concatenate([wih1.astype(f32), whh1.astype(f32)], axis=0)   # (2H, 4H)
    b1p = b1.astype(f32)
    wf1p = wf1.astype(f32)
    bf1p = bf1.astype(f32)
    wf2p = jnp.pad(wf2.astype(f32), ((0, 0), (0, Doutp - Dout)))
    bf2p = jnp.pad(bf2.astype(f32), ((0, 0), (0, Doutp - Dout)))

    # batch-first -> time-major, pad time & batch, split batch tiles,
    # flatten to (n_bt, Tp*Bt, Din) with rows ordered (t, b) inside each tile.
    x_tm = jnp.transpose(x.astype(f32), (1, 0, 2))               # (T, B, Din)
    x_tm = jnp.pad(x_tm, ((0, Tp - T), (0, Bp - B), (0, 0)))     # (Tp, Bp, Din)
    x3d = (x_tm.reshape(Tp, n_bt, Bt, Din)
               .transpose(1, 0, 2, 3)
               .reshape(n_bt, Tp * Bt, Din))

    kernel = functools.partial(
        lstm_pinn_kernel, h=H, bt=Bt, tt=Tt, unroll=min(Tt, 8))

    weights = (wih0p, whh0p, b0p, w1s, b1p, wf1p, bf1p, wf2p, bf2p)

    flops = int(2 * Tp * Bp * (4 * H * (Din + H + 2 * H) + H * H + H * Doutp))
    transcendentals = int(Tp * Bp * 11 * H)
    bytes_accessed = int(
        4 * (x3d.size + n_bt * Tp * Bt * Doutp + sum(w.size for w in weights)))
    cost = pl.CostEstimate(
        flops=flops, transcendentals=transcendentals, bytes_accessed=bytes_accessed)

    # Explicit VMEM limit: chunk scratch + double-buffered x/out tiles + weights.
    scratch_bytes = 4 * (Tt * Bt * (4 * H + H) + 4 * Bt * H)
    stream_bytes = 2 * 4 * Tt * Bt * (Din + Doutp)
    weight_bytes = 2 * 4 * sum(w.size for w in weights)
    vmem_limit = int(min(
        48 << 20,
        max(16 << 20, scratch_bytes + stream_bytes + weight_bytes + (2 << 20))))

    def w_spec(w):
        return pl.BlockSpec(w.shape, lambda bt, t: (0, 0))

    out3d = pl.pallas_call(
        kernel,
        out_shape=jax.ShapeDtypeStruct((n_bt, Tp * Bt, Doutp), f32),
        grid=(n_bt, n_chunks),
        in_specs=[
            pl.BlockSpec((None, Tt * Bt, Din), lambda bt, t: (bt, t, 0)),  # x chunk
            *[w_spec(w) for w in weights],
        ],
        out_specs=pl.BlockSpec((None, Tt * Bt, Doutp), lambda bt, t: (bt, t, 0)),
        scratch_shapes=[
            pltpu.VMEM((Bt, H), f32),            # h0 (persists across time chunks)
            pltpu.VMEM((Bt, H), f32),            # c0
            pltpu.VMEM((Bt, H), f32),            # h1
            pltpu.VMEM((Bt, H), f32),            # c1
            pltpu.VMEM((Tt * Bt, 4 * H), f32),   # hoisted layer-0 input gates
            pltpu.VMEM((Tt * Bt, H), f32),       # h1 history for the FC head
        ],
        compiler_params=pltpu.CompilerParams(
            dimension_semantics=("parallel", "arbitrary"),   # batch ∥, time serial
            vmem_limit_bytes=vmem_limit,
        ),
        cost_estimate=cost,
    )(x3d, *weights)

    out = (out3d.reshape(n_bt, Tp, Bt, Doutp)
                .transpose(1, 0, 2, 3)
                .reshape(Tp, Bp, Doutp)[:T, :B, :Dout])
    return jnp.transpose(out, (1, 0, 2))


# -----------------------------------------------------------------------------
# Deterministic synthetic parameter init (shapes match nn.LSTM / nn.Linear,
# weights stored pre-transposed so the kernel does `x @ W`).
# -----------------------------------------------------------------------------
def init_params(key, in_dim, hidden_dim, out_dim):
    H = hidden_dim
    bound = 1.0 / (H ** 0.5)
    keys = jax.random.split(key, 10)

    def u(k, shape):
        return jax.random.uniform(k, shape, jnp.float32, minval=-bound, maxval=bound)

    wih0 = u(keys[0], (in_dim, 4 * H))
    whh0 = u(keys[1], (H, 4 * H))
    b0   = u(keys[2], (1, 4 * H))            # combined b_ih_l0 + b_hh_l0
    wih1 = u(keys[3], (H, 4 * H))
    whh1 = u(keys[4], (H, 4 * H))
    b1   = u(keys[5], (1, 4 * H))
    wf1  = u(keys[6], (H, H))
    bf1  = u(keys[7], (1, H))
    wf2  = u(keys[8], (H, out_dim))
    bf2  = u(keys[9], (1, out_dim))
    return (wih0, whh0, b0, wih1, whh1, b1, wf1, bf1, wf2, bf2)


# -----------------------------------------------------------------------------
# Pure-JAX reference (same math) for correctness checks.
# -----------------------------------------------------------------------------
def ref_forward(x, params, hidden_dim):
    (wih0, whh0, b0, wih1, whh1, b1, wf1, bf1, wf2, bf2) = params
    H = hidden_dim
    B, T, _ = x.shape

    def cell(x_t, h, c, wih, whh, b):
        g = x_t @ wih + h @ whh + b
        i = jax.nn.sigmoid(g[:, :H])
        f = jax.nn.sigmoid(g[:, H:2 * H])
        gg = jnp.tanh(g[:, 2 * H:3 * H])
        o = jax.nn.sigmoid(g[:, 3 * H:])
        c = f * c + i * gg
        h = o * jnp.tanh(c)
        return h, c

    h0 = c0 = h1 = c1 = jnp.zeros((B, H), jnp.float32)
    outs = []
    for t in range(T):
        h0, c0 = cell(x[:, t], h0, c0, wih0, whh0, b0)
        h1, c1 = cell(h0, h1, c1, wih1, whh1, b1)
        z = jnp.tanh(h1 @ wf1 + bf1)
        outs.append(z @ wf2 + bf2)
    return jnp.stack(outs, axis=1)


if __name__ == "__main__":
    key = jax.random.PRNGKey(0)

    # Case 1: spec-like small shapes (single chunk, single batch tile).
    in_dim, hidden_dim, out_dim = 3, 32, 2
    batch, seq = 2, 8
    k_x, k_p, key = jax.random.split(key, 3)
    x = jax.random.normal(k_x, (batch, seq, in_dim), jnp.float32)
    params = init_params(k_p, in_dim, hidden_dim, out_dim)
    y = jax.block_until_ready(lstm_pinn_forward(x, params, hidden_dim))
    y_ref = ref_forward(x, params, hidden_dim)
    assert y.shape == (batch, seq, out_dim)
    assert jnp.allclose(y, y_ref, atol=1e-4, rtol=1e-4), "case1 mismatch vs. reference"

    # Case 2: multi-chunk path (T not a multiple of time_chunk), two batch tiles
    # (padded batch), module-default hidden_dim=64.
    in_dim2, hidden_dim2, out_dim2 = 3, 64, 2
    batch2, seq2 = 10, 10
    k_x2, k_p2, _ = jax.random.split(key, 3)
    x2 = jax.random.normal(k_x2, (batch2, seq2, in_dim2), jnp.float32)
    params2 = init_params(k_p2, in_dim2, hidden_dim2, out_dim2)
    y2 = jax.block_until_ready(
        lstm_pinn_forward(x2, params2, hidden_dim2, time_chunk=4, batch_tile=8))
    y2_ref = ref_forward(x2, params2, hidden_dim2)
    assert y2.shape == (batch2, seq2, out_dim2)
    assert jnp.allclose(y2, y2_ref, atol=1e-4, rtol=1e-4), "case2 mismatch vs. reference"

    print("KERNEL_OK")
</pallas_src>

<mosaic_0001>
module attributes {stable_mosaic.version = 11 : i64} {
  func.func @lstm_pinn_kernel(%arg0: i32, %arg1: i32, %arg2: memref<1x64x3xf32, #tpu.memory_space<vmem>>, %arg3: memref<3x128xf32, #tpu.memory_space<vmem>>, %arg4: memref<32x128xf32, #tpu.memory_space<vmem>>, %arg5: memref<1x128xf32, #tpu.memory_space<vmem>>, %arg6: memref<64x128xf32, #tpu.memory_space<vmem>>, %arg7: memref<1x128xf32, #tpu.memory_space<vmem>>, %arg8: memref<32x32xf32, #tpu.memory_space<vmem>>, %arg9: memref<1x32xf32, #tpu.memory_space<vmem>>, %arg10: memref<32x128xf32, #tpu.memory_space<vmem>>, %arg11: memref<1x128xf32, #tpu.memory_space<vmem>>, %arg12: memref<1x64x128xf32, #tpu.memory_space<vmem>>, %arg13: memref<8x32xf32, #tpu.memory_space<vmem>>, %arg14: memref<8x32xf32, #tpu.memory_space<vmem>>, %arg15: memref<8x32xf32, #tpu.memory_space<vmem>>, %arg16: memref<8x32xf32, #tpu.memory_space<vmem>>, %arg17: memref<64x128xf32, #tpu.memory_space<vmem>>, %arg18: memref<64x32xf32, #tpu.memory_space<vmem>>) attributes {dimension_semantics = [#tpu.dimension_semantics<parallel>, #tpu.dimension_semantics<arbitrary>], iteration_bounds = array<i64: 1, 1>, scalar_prefetch = 0 : i64, scratch_operands = 6 : i64, tpu.core_type = #tpu.core_type<tc>, window_params = [{transform_indices = @transform_0, window_bounds = array<i64: 1, 64, 3>}, {pipeline_mode = #tpu.pipeline_mode<synchronous>, transform_indices = @transform_1, window_bounds = array<i64: 3, 128>}, {pipeline_mode = #tpu.pipeline_mode<synchronous>, transform_indices = @transform_2, window_bounds = array<i64: 32, 128>}, {pipeline_mode = #tpu.pipeline_mode<synchronous>, transform_indices = @transform_3, window_bounds = array<i64: 1, 128>}, {pipeline_mode = #tpu.pipeline_mode<synchronous>, transform_indices = @transform_4, window_bounds = array<i64: 64, 128>}, {pipeline_mode = #tpu.pipeline_mode<synchronous>, transform_indices = @transform_5, window_bounds = array<i64: 1, 128>}, {pipeline_mode = #tpu.pipeline_mode<synchronous>, transform_indices = @transform_6, window_bounds = array<i64: 32, 32>}, {pipeline_mode = #tpu.pipeline_mode<synchronous>, transform_indices = @transform_7, window_bounds = array<i64: 1, 32>}, {pipeline_mode = #tpu.pipeline_mode<synchronous>, transform_indices = @transform_8, window_bounds = array<i64: 32, 128>}, {pipeline_mode = #tpu.pipeline_mode<synchronous>, transform_indices = @transform_9, window_bounds = array<i64: 1, 128>}, {transform_indices = @transform_10, window_bounds = array<i64: 1, 64, 128>}]} {
    %c0_i32 = arith.constant 0 : i32
    %0 = arith.cmpi eq, %arg1, %c0_i32 : i32
    %1 = arith.extui %0 : i1 to i32
    %c0_i32_0 = arith.constant 0 : i32
    %2 = arith.cmpi ne, %1, %c0_i32_0 : i32
    scf.if %2 {
      %cst_135 = arith.constant 0.000000e+00 : f32
      %527 = vector.broadcast %cst_135 : f32 to vector<8x32xf32>
      %c0_136 = arith.constant 0 : index
      %c0_137 = arith.constant 0 : index
      %528 = vector.load %arg13[%c0_136, %c0_137] : memref<8x32xf32, #tpu.memory_space<vmem>>, vector<8x32xf32>
      tpu.vector_store %arg13[%c0_136, %c0_137], %527 {strides = array<i32>} : memref<8x32xf32, #tpu.memory_space<vmem>>, vector<8x32xf32>,
      %cst_138 = arith.constant 0.000000e+00 : f32
      %529 = vector.broadcast %cst_138 : f32 to vector<8x32xf32>
      %c0_139 = arith.constant 0 : index
      %c0_140 = arith.constant 0 : index
      %530 = vector.load %arg14[%c0_139, %c0_140] : memref<8x32xf32, #tpu.memory_space<vmem>>, vector<8x32xf32>
      tpu.vector_store %arg14[%c0_139, %c0_140], %529 {strides = array<i32>} : memref<8x32xf32, #tpu.memory_space<vmem>>, vector<8x32xf32>,
      %cst_141 = arith.constant 0.000000e+00 : f32
      %531 = vector.broadcast %cst_141 : f32 to vector<8x32xf32>
      %c0_142 = arith.constant 0 : index
      %c0_143 = arith.constant 0 : index
      %532 = vector.load %arg15[%c0_142, %c0_143] : memref<8x32xf32, #tpu.memory_space<vmem>>, vector<8x32xf32>
      tpu.vector_store %arg15[%c0_142, %c0_143], %531 {strides = array<i32>} : memref<8x32xf32, #tpu.memory_space<vmem>>, vector<8x32xf32>,
      %cst_144 = arith.constant 0.000000e+00 : f32
      %533 = vector.broadcast %cst_144 : f32 to vector<8x32xf32>
      %c0_145 = arith.constant 0 : index
      %c0_146 = arith.constant 0 : index
      %534 = vector.load %arg16[%c0_145, %c0_146] : memref<8x32xf32, #tpu.memory_space<vmem>>, vector<8x32xf32>
      tpu.vector_store %arg16[%c0_145, %c0_146], %533 {strides = array<i32>} : memref<8x32xf32, #tpu.memory_space<vmem>>, vector<8x32xf32>,
    } else {
    }
    %c0 = arith.constant 0 : index
    %c0_1 = arith.constant 0 : index
    %c0_2 = arith.constant 0 : index
    %3 = vector.load %arg2[%c0, %c0_1, %c0_2] : memref<1x64x3xf32, #tpu.memory_space<vmem>>, vector<1x64x3xf32>
    %4 = vector.shape_cast %3 : vector<1x64x3xf32> to vector<64x3xf32>
    %c0_3 = arith.constant 0 : index
    %c0_4 = arith.constant 0 : index
    %5 = vector.load %arg3[%c0_3, %c0_4] : memref<3x128xf32, #tpu.memory_space<vmem>>, vector<3x128xf32>
    %cst = arith.constant dense<0.000000e+00> : vector<64x128xf32>
    %6 = tpu.matmul %4, %5, %cst {dimension_numbers = #tpu.dot_dimension_numbers<[1], [0], [0], [1], [0, 0, 1, 1], [], []>} : vector<64x3xf32>, vector<3x128xf32>, vector<64x128xf32> -> vector<64x128xf32>
    %c0_5 = arith.constant 0 : index
    %c0_6 = arith.constant 0 : index
    %7 = vector.load %arg5[%c0_5, %c0_6] : memref<1x128xf32, #tpu.memory_space<vmem>>, vector<1x128xf32>
    %8 = vector.broadcast %7 : vector<1x128xf32> to vector<64x128xf32>
    %9 = arith.addf %6, %8 : vector<64x128xf32>
    %c0_7 = arith.constant 0 : index
    %c0_8 = arith.constant 0 : index
    %10 = vector.load %arg17[%c0_7, %c0_8] : memref<64x128xf32, #tpu.memory_space<vmem>>, vector<64x128xf32>
    tpu.vector_store %arg17[%c0_7, %c0_8], %9 {strides = array<i32>} : memref<64x128xf32, #tpu.memory_space<vmem>>, vector<64x128xf32>,
    %c0_9 = arith.constant 0 : index
    %c0_10 = arith.constant 0 : index
    %11 = vector.load %arg7[%c0_9, %c0_10] : memref<1x128xf32, #tpu.memory_space<vmem>>, vector<1x128xf32>
    %12 = vector.shape_cast %11 : vector<1x128xf32> to vector<1x128xf32>
    %13 = vector.broadcast %12 : vector<1x128xf32> to vector<8x128xf32>
    %c0_11 = arith.constant 0 : index
    %c0_12 = arith.constant 0 : index
    %14 = vector.load %arg4[%c0_11, %c0_12] : memref<32x128xf32, #tpu.memory_space<vmem>>, vector<32x128xf32>
    %c0_13 = arith.constant 0 : index
    %c0_14 = arith.constant 0 : index
    %15 = vector.load %arg6[%c0_13, %c0_14] : memref<64x128xf32, #tpu.memory_space<vmem>>, vector<64x128xf32>
    %c0_15 = arith.constant 0 : index
    %c0_16 = arith.constant 0 : index
    %16 = vector.load %arg13[%c0_15, %c0_16] : memref<8x32xf32, #tpu.memory_space<vmem>>, vector<8x32xf32>
    %c0_17 = arith.constant 0 : index
    %c0_18 = arith.constant 0 : index
    %17 = vector.load %arg14[%c0_17, %c0_18] : memref<8x32xf32, #tpu.memory_space<vmem>>, vector<8x32xf32>
    %c0_19 = arith.constant 0 : index
    %c0_20 = arith.constant 0 : index
    %18 = vector.load %arg15[%c0_19, %c0_20] : memref<8x32xf32, #tpu.memory_space<vmem>>, vector<8x32xf32>
    %c0_21 = arith.constant 0 : index
    %c0_22 = arith.constant 0 : index
    %19 = vector.load %arg16[%c0_21, %c0_22] : memref<8x32xf32, #tpu.memory_space<vmem>>, vector<8x32xf32>
    %c0_i32_23 = arith.constant 0 : i32
    %c8_i32 = arith.constant 8 : i32
    %20 = arith.muli %c0_i32_23, %c8_i32 : i32
    %21 = tpu.assume_multiple %20, 8 : i32
    %22 = arith.index_cast %21 : i32 to index
    %c0_24 = arith.constant 0 : index
    %23 = vector.load %arg17[%22, %c0_24] : memref<64x128xf32, #tpu.memory_space<vmem>>, vector<8x128xf32>
    %cst_25 = arith.constant dense<0.000000e+00> : vector<8x128xf32>
    %24 = tpu.matmul %16, %14, %cst_25 {dimension_numbers = #tpu.dot_dimension_numbers<[1], [0], [0], [1], [0, 0, 1, 1], [], []>} : vector<8x32xf32>, vector<32x128xf32>, vector<8x128xf32> -> vector<8x128xf32>
    %25 = arith.addf %23, %24 : vector<8x128xf32>
    %26 = vector.extract_strided_slice %25 {offsets = [0, 0], sizes = [8, 32], strides = [1, 1]} : vector<8x128xf32> to vector<8x32xf32>
    %27 = arith.negf %26 : vector<8x32xf32>
    %28 = math.exp %27 : vector<8x32xf32>
    %cst_26 = arith.constant 1.000000e+00 : f32
    %29 = vector.broadcast %cst_26 : f32 to vector<8x32xf32>
    %30 = arith.addf %29, %28 : vector<8x32xf32>
    %31 = arith.divf %29, %30 : vector<8x32xf32>
    %32 = vector.extract_strided_slice %25 {offsets = [0, 32], sizes = [8, 32], strides = [1, 1]} : vector<8x128xf32> to vector<8x32xf32>
    %33 = arith.negf %32 : vector<8x32xf32>
    %34 = math.exp %33 : vector<8x32xf32>
    %cst_27 = arith.constant 1.000000e+00 : f32
    %35 = vector.broadcast %cst_27 : f32 to vector<8x32xf32>
    %36 = arith.addf %35, %34 : vector<8x32xf32>
    %37 = arith.divf %35, %36 : vector<8x32xf32>
    %38 = vector.extract_strided_slice %25 {offsets = [0, 64], sizes = [8, 32], strides = [1, 1]} : vector<8x128xf32> to vector<8x32xf32>
    %39 = math.tanh %38 : vector<8x32xf32>
    %40 = vector.extract_strided_slice %25 {offsets = [0, 96], sizes = [8, 32], strides = [1, 1]} : vector<8x128xf32> to vector<8x32xf32>
    %41 = arith.negf %40 : vector<8x32xf32>
    %42 = math.exp %41 : vector<8x32xf32>
    %cst_28 = arith.constant 1.000000e+00 : f32
    %43 = vector.broadcast %cst_28 : f32 to vector<8x32xf32>
    %44 = arith.addf %43, %42 : vector<8x32xf32>
    %45 = arith.divf %43, %44 : vector<8x32xf32>
    %46 = arith.mulf %37, %17 : vector<8x32xf32>
    %47 = arith.mulf %31, %39 : vector<8x32xf32>
    %48 = arith.addf %46, %47 : vector<8x32xf32>
    %49 = math.tanh %48 : vector<8x32xf32>
    %50 = arith.mulf %45, %49 : vector<8x32xf32>
    %51 = tpu.concatenate %50, %18 in 1 : vector<8x32xf32>, vector<8x32xf32> -> vector<8x64xf32>
    %cst_29 = arith.constant dense<0.000000e+00> : vector<8x128xf32>
    %52 = tpu.matmul %51, %15, %cst_29 {dimension_numbers = #tpu.dot_dimension_numbers<[1], [0], [0], [1], [0, 0, 1, 1], [], []>} : vector<8x64xf32>, vector<64x128xf32>, vector<8x128xf32> -> vector<8x128xf32>
    %53 = arith.addf %52, %13 : vector<8x128xf32>
    %54 = vector.extract_strided_slice %53 {offsets = [0, 0], sizes = [8, 32], strides = [1, 1]} : vector<8x128xf32> to vector<8x32xf32>
    %55 = arith.negf %54 : vector<8x32xf32>
    %56 = math.exp %55 : vector<8x32xf32>
    %cst_30 = arith.constant 1.000000e+00 : f32
    %57 = vector.broadcast %cst_30 : f32 to vector<8x32xf32>
    %58 = arith.addf %57, %56 : vector<8x32xf32>
    %59 = arith.divf %57, %58 : vector<8x32xf32>
    %60 = vector.extract_strided_slice %53 {offsets = [0, 32], sizes = [8, 32], strides = [1, 1]} : vector<8x128xf32> to vector<8x32xf32>
    %61 = arith.negf %60 : vector<8x32xf32>
    %62 = math.exp %61 : vector<8x32xf32>
    %cst_31 = arith.constant 1.000000e+00 : f32
    %63 = vector.broadcast %cst_31 : f32 to vector<8x32xf32>
    %64 = arith.addf %63, %62 : vector<8x32xf32>
    %65 = arith.divf %63, %64 : vector<8x32xf32>
    %66 = vector.extract_strided_slice %53 {offsets = [0, 64], sizes = [8, 32], strides = [1, 1]} : vector<8x128xf32> to vector<8x32xf32>
    %67 = math.tanh %66 : vector<8x32xf32>
    %68 = vector.extract_strided_slice %53 {offsets = [0, 96], sizes = [8, 32], strides = [1, 1]} : vector<8x128xf32> to vector<8x32xf32>
    %69 = arith.negf %68 : vector<8x32xf32>
    %70 = math.exp %69 : vector<8x32xf32>
    %cst_32 = arith.constant 1.000000e+00 : f32
    %71 = vector.broadcast %cst_32 : f32 to vector<8x32xf32>
    %72 = arith.addf %71, %70 : vector<8x32xf32>
    %73 = arith.divf %71, %72 : vector<8x32xf32>
    %74 = arith.mulf %65, %19 : vector<8x32xf32>
    %75 = arith.mulf %59, %67 : vector<8x32xf32>
    %76 = arith.addf %74, %75 : vector<8x32xf32>
    %77 = math.tanh %76 : vector<8x32xf32>
    %78 = arith.mulf %73, %77 : vector<8x32xf32>
    %79 = arith.index_cast %21 : i32 to index
    %c0_33 = arith.constant 0 : index
    %80 = vector.load %arg18[%79, %c0_33] : memref<64x32xf32, #tpu.memory_space<vmem>>, vector<8x32xf32>
    tpu.vector_store %arg18[%79, %c0_33], %78 {strides = array<i32>} : memref<64x32xf32, #tpu.memory_space<vmem>>, vector<8x32xf32>,
    %c1_i32 = arith.constant 1 : i32
    %c8_i32_34 = arith.constant 8 : i32
    %81 = arith.muli %c1_i32, %c8_i32_34 : i32
    %82 = tpu.assume_multiple %81, 8 : i32
    %83 = arith.index_cast %82 : i32 to index
    %c0_35 = arith.constant 0 : index
    %84 = vector.load %arg17[%83, %c0_35] : memref<64x128xf32, #tpu.memory_space<vmem>>, vector<8x128xf32>
    %cst_36 = arith.constant dense<0.000000e+00> : vector<8x128xf32>
    %85 = tpu.matmul %50, %14, %cst_36 {dimension_numbers = #tpu.dot_dimension_numbers<[1], [0], [0], [1], [0, 0, 1, 1], [], []>} : vector<8x32xf32>, vector<32x128xf32>, vector<8x128xf32> -> vector<8x128xf32>
    %86 = arith.addf %84, %85 : vector<8x128xf32>
    %87 = vector.extract_strided_slice %86 {offsets = [0, 0], sizes = [8, 32], strides = [1, 1]} : vector<8x128xf32> to vector<8x32xf32>
    %88 = arith.negf %87 : vector<8x32xf32>
    %89 = math.exp %88 : vector<8x32xf32>
    %cst_37 = arith.constant 1.000000e+00 : f32
    %90 = vector.broadcast %cst_37 : f32 to vector<8x32xf32>
    %91 = arith.addf %90, %89 : vector<8x32xf32>
    %92 = arith.divf %90, %91 : vector<8x32xf32>
    %93 = vector.extract_strided_slice %86 {offsets = [0, 32], sizes = [8, 32], strides = [1, 1]} : vector<8x128xf32> to vector<8x32xf32>
    %94 = arith.negf %93 : vector<8x32xf32>
    %95 = math.exp %94 : vector<8x32xf32>
    %cst_38 = arith.constant 1.000000e+00 : f32
    %96 = vector.broadcast %cst_38 : f32 to vector<8x32xf32>
    %97 = arith.addf %96, %95 : vector<8x32xf32>
    %98 = arith.divf %96, %97 : vector<8x32xf32>
    %99 = vector.extract_strided_slice %86 {offsets = [0, 64], sizes = [8, 32], strides = [1, 1]} : vector<8x128xf32> to vector<8x32xf32>
    %100 = math.tanh %99 : vector<8x32xf32>
    %101 = vector.extract_strided_slice %86 {offsets = [0, 96], sizes = [8, 32], strides = [1, 1]} : vector<8x128xf32> to vector<8x32xf32>
    %102 = arith.negf %101 : vector<8x32xf32>
    %103 = math.exp %102 : vector<8x32xf32>
    %cst_39 = arith.constant 1.000000e+00 : f32
    %104 = vector.broadcast %cst_39 : f32 to vector<8x32xf32>
    %105 = arith.addf %104, %103 : vector<8x32xf32>
    %106 = arith.divf %104, %105 : vector<8x32xf32>
    %107 = arith.mulf %98, %48 : vector<8x32xf32>
    %108 = arith.mulf %92, %100 : vector<8x32xf32>
    %109 = arith.addf %107, %108 : vector<8x32xf32>
    %110 = math.tanh %109 : vector<8x32xf32>
    %111 = arith.mulf %106, %110 : vector<8x32xf32>
    %112 = tpu.concatenate %111, %78 in 1 : vector<8x32xf32>, vector<8x32xf32> -> vector<8x64xf32>
    %cst_40 = arith.constant dense<0.000000e+00> : vector<8x128xf32>
    %113 = tpu.matmul %112, %15, %cst_40 {dimension_numbers = #tpu.dot_dimension_numbers<[1], [0], [0], [1], [0, 0, 1, 1], [], []>} : vector<8x64xf32>, vector<64x128xf32>, vector<8x128xf32> -> vector<8x128xf32>
    %114 = arith.addf %113, %13 : vector<8x128xf32>
    %115 = vector.extract_strided_slice %114 {offsets = [0, 0], sizes = [8, 32], strides = [1, 1]} : vector<8x128xf32> to vector<8x32xf32>
    %116 = arith.negf %115 : vector<8x32xf32>
    %117 = math.exp %116 : vector<8x32xf32>
    %cst_41 = arith.constant 1.000000e+00 : f32
    %118 = vector.broadcast %cst_41 : f32 to vector<8x32xf32>
    %119 = arith.addf %118, %117 : vector<8x32xf32>
    %120 = arith.divf %118, %119 : vector<8x32xf32>
    %121 = vector.extract_strided_slice %114 {offsets = [0, 32], sizes = [8, 32], strides = [1, 1]} : vector<8x128xf32> to vector<8x32xf32>
    %122 = arith.negf %121 : vector<8x32xf32>
    %123 = math.exp %122 : vector<8x32xf32>
    %cst_42 = arith.constant 1.000000e+00 : f32
    %124 = vector.broadcast %cst_42 : f32 to vector<8x32xf32>
    %125 = arith.addf %124, %123 : vector<8x32xf32>
    %126 = arith.divf %124, %125 : vector<8x32xf32>
    %127 = vector.extract_strided_slice %114 {offsets = [0, 64], sizes = [8, 32], strides = [1, 1]} : vector<8x128xf32> to vector<8x32xf32>
    %128 = math.tanh %127 : vector<8x32xf32>
    %129 = vector.extract_strided_slice %114 {offsets = [0, 96], sizes = [8, 32], strides = [1, 1]} : vector<8x128xf32> to vector<8x32xf32>
    %130 = arith.negf %129 : vector<8x32xf32>
    %131 = math.exp %130 : vector<8x32xf32>
    %cst_43 = arith.constant 1.000000e+00 : f32
    %132 = vector.broadcast %cst_43 : f32 to vector<8x32xf32>
    %133 = arith.addf %132, %131 : vector<8x32xf32>
    %134 = arith.divf %132, %133 : vector<8x32xf32>
    %135 = arith.mulf %126, %76 : vector<8x32xf32>
    %136 = arith.mulf %120, %128 : vector<8x32xf32>
    %137 = arith.addf %135, %136 : vector<8x32xf32>
    %138 = math.tanh %137 : vector<8x32xf32>
    %139 = arith.mulf %134, %138 : vector<8x32xf32>
    %140 = arith.index_cast %82 : i32 to index
    %c0_44 = arith.constant 0 : index
    %141 = vector.load %arg18[%140, %c0_44] : memref<64x32xf32, #tpu.memory_space<vmem>>, vector<8x32xf32>
    tpu.vector_store %arg18[%140, %c0_44], %139 {strides = array<i32>} : memref<64x32xf32, #tpu.memory_space<vmem>>, vector<8x32xf32>,
    %c2_i32 = arith.constant 2 : i32
    %c8_i32_45 = arith.constant 8 : i32
    %142 = arith.muli %c2_i32, %c8_i32_45 : i32
    %143 = tpu.assume_multiple %142, 8 : i32
    %144 = arith.index_cast %143 : i32 to index
    %c0_46 = arith.constant 0 : index
    %145 = vector.load %arg17[%144, %c0_46] : memref<64x128xf32, #tpu.memory_space<vmem>>, vector<8x128xf32>
    %cst_47 = arith.constant dense<0.000000e+00> : vector<8x128xf32>
    %146 = tpu.matmul %111, %14, %cst_47 {dimension_numbers = #tpu.dot_dimension_numbers<[1], [0], [0], [1], [0, 0, 1, 1], [], []>} : vector<8x32xf32>, vector<32x128xf32>, vector<8x128xf32> -> vector<8x128xf32>
    %147 = arith.addf %145, %146 : vector<8x128xf32>
    %148 = vector.extract_strided_slice %147 {offsets = [0, 0], sizes = [8, 32], strides = [1, 1]} : vector<8x128xf32> to vector<8x32xf32>
    %149 = arith.negf %148 : vector<8x32xf32>
    %150 = math.exp %149 : vector<8x32xf32>
    %cst_48 = arith.constant 1.000000e+00 : f32
    %151 = vector.broadcast %cst_48 : f32 to vector<8x32xf32>
    %152 = arith.addf %151, %150 : vector<8x32xf32>
    %153 = arith.divf %151, %152 : vector<8x32xf32>
    %154 = vector.extract_strided_slice %147 {offsets = [0, 32], sizes = [8, 32], strides = [1, 1]} : vector<8x128xf32> to vector<8x32xf32>
    %155 = arith.negf %154 : vector<8x32xf32>
    %156 = math.exp %155 : vector<8x32xf32>
    %cst_49 = arith.constant 1.000000e+00 : f32
    %157 = vector.broadcast %cst_49 : f32 to vector<8x32xf32>
    %158 = arith.addf %157, %156 : vector<8x32xf32>
    %159 = arith.divf %157, %158 : vector<8x32xf32>
    %160 = vector.extract_strided_slice %147 {offsets = [0, 64], sizes = [8, 32], strides = [1, 1]} : vector<8x128xf32> to vector<8x32xf32>
    %161 = math.tanh %160 : vector<8x32xf32>
    %162 = vector.extract_strided_slice %147 {offsets = [0, 96], sizes = [8, 32], strides = [1, 1]} : vector<8x128xf32> to vector<8x32xf32>
    %163 = arith.negf %162 : vector<8x32xf32>
    %164 = math.exp %163 : vector<8x32xf32>
    %cst_50 = arith.constant 1.000000e+00 : f32
    %165 = vector.broadcast %cst_50 : f32 to vector<8x32xf32>
    %166 = arith.addf %165, %164 : vector<8x32xf32>
    %167 = arith.divf %165, %166 : vector<8x32xf32>
    %168 = arith.mulf %159, %109 : vector<8x32xf32>
    %169 = arith.mulf %153, %161 : vector<8x32xf32>
    %170 = arith.addf %168, %169 : vector<8x32xf32>
    %171 = math.tanh %170 : vector<8x32xf32>
    %172 = arith.mulf %167, %171 : vector<8x32xf32>
    %173 = tpu.concatenate %172, %139 in 1 : vector<8x32xf32>, vector<8x32xf32> -> vector<8x64xf32>
    %cst_51 = arith.constant dense<0.000000e+00> : vector<8x128xf32>
    %174 = tpu.matmul %173, %15, %cst_51 {dimension_numbers = #tpu.dot_dimension_numbers<[1], [0], [0], [1], [0, 0, 1, 1], [], []>} : vector<8x64xf32>, vector<64x128xf32>, vector<8x128xf32> -> vector<8x128xf32>
    %175 = arith.addf %174, %13 : vector<8x128xf32>
    %176 = vector.extract_strided_slice %175 {offsets = [0, 0], sizes = [8, 32], strides = [1, 1]} : vector<8x128xf32> to vector<8x32xf32>
    %177 = arith.negf %176 : vector<8x32xf32>
    %178 = math.exp %177 : vector<8x32xf32>
    %cst_52 = arith.constant 1.000000e+00 : f32
    %179 = vector.broadcast %cst_52 : f32 to vector<8x32xf32>
    %180 = arith.addf %179, %178 : vector<8x32xf32>
    %181 = arith.divf %179, %180 : vector<8x32xf32>
    %182 = vector.extract_strided_slice %175 {offsets = [0, 32], sizes = [8, 32], strides = [1, 1]} : vector<8x128xf32> to vector<8x32xf32>
    %183 = arith.negf %182 : vector<8x32xf32>
    %184 = math.exp %183 : vector<8x32xf32>
    %cst_53 = arith.constant 1.000000e+00 : f32
    %185 = vector.broadcast %cst_53 : f32 to vector<8x32xf32>
    %186 = arith.addf %185, %184 : vector<8x32xf32>
    %187 = arith.divf %185, %186 : vector<8x32xf32>
    %188 = vector.extract_strided_slice %175 {offsets = [0, 64], sizes = [8, 32], strides = [1, 1]} : vector<8x128xf32> to vector<8x32xf32>
    %189 = math.tanh %188 : vector<8x32xf32>
    %190 = vector.extract_strided_slice %175 {offsets = [0, 96], sizes = [8, 32], strides = [1, 1]} : vector<8x128xf32> to vector<8x32xf32>
    %191 = arith.negf %190 : vector<8x32xf32>
    %192 = math.exp %191 : vector<8x32xf32>
    %cst_54 = arith.constant 1.000000e+00 : f32
    %193 = vector.broadcast %cst_54 : f32 to vector<8x32xf32>
    %194 = arith.addf %193, %192 : vector<8x32xf32>
    %195 = arith.divf %193, %194 : vector<8x32xf32>
    %196 = arith.mulf %187, %137 : vector<8x32xf32>
    %197 = arith.mulf %181, %189 : vector<8x32xf32>
    %198 = arith.addf %196, %197 : vector<8x32xf32>
    %199 = math.tanh %198 : vector<8x32xf32>
    %200 = arith.mulf %195, %199 : vector<8x32xf32>
    %201 = arith.index_cast %143 : i32 to index
    %c0_55 = arith.constant 0 : index
    %202 = vector.load %arg18[%201, %c0_55] : memref<64x32xf32, #tpu.memory_space<vmem>>, vector<8x32xf32>
    tpu.vector_store %arg18[%201, %c0_55], %200 {strides = array<i32>} : memref<64x32xf32, #tpu.memory_space<vmem>>, vector<8x32xf32>,
    %c3_i32 = arith.constant 3 : i32
    %c8_i32_56 = arith.constant 8 : i32
    %203 = arith.muli %c3_i32, %c8_i32_56 : i32
    %204 = tpu.assume_multiple %203, 8 : i32
    %205 = arith.index_cast %204 : i32 to index
    %c0_57 = arith.constant 0 : index
    %206 = vector.load %arg17[%205, %c0_57] : memref<64x128xf32, #tpu.memory_space<vmem>>, vector<8x128xf32>
    %cst_58 = arith.constant dense<0.000000e+00> : vector<8x128xf32>
    %207 = tpu.matmul %172, %14, %cst_58 {dimension_numbers = #tpu.dot_dimension_numbers<[1], [0], [0], [1], [0, 0, 1, 1], [], []>} : vector<8x32xf32>, vector<32x128xf32>, vector<8x128xf32> -> vector<8x128xf32>
    %208 = arith.addf %206, %207 : vector<8x128xf32>
    %209 = vector.extract_strided_slice %208 {offsets = [0, 0], sizes = [8, 32], strides = [1, 1]} : vector<8x128xf32> to vector<8x32xf32>
    %210 = arith.negf %209 : vector<8x32xf32>
    %211 = math.exp %210 : vector<8x32xf32>
    %cst_59 = arith.constant 1.000000e+00 : f32
    %212 = vector.broadcast %cst_59 : f32 to vector<8x32xf32>
    %213 = arith.addf %212, %211 : vector<8x32xf32>
    %214 = arith.divf %212, %213 : vector<8x32xf32>
    %215 = vector.extract_strided_slice %208 {offsets = [0, 32], sizes = [8, 32], strides = [1, 1]} : vector<8x128xf32> to vector<8x32xf32>
    %216 = arith.negf %215 : vector<8x32xf32>
    %217 = math.exp %216 : vector<8x32xf32>
    %cst_60 = arith.constant 1.000000e+00 : f32
    %218 = vector.broadcast %cst_60 : f32 to vector<8x32xf32>
    %219 = arith.addf %218, %217 : vector<8x32xf32>
    %220 = arith.divf %218, %219 : vector<8x32xf32>
    %221 = vector.extract_strided_slice %208 {offsets = [0, 64], sizes = [8, 32], strides = [1, 1]} : vector<8x128xf32> to vector<8x32xf32>
    %222 = math.tanh %221 : vector<8x32xf32>
    %223 = vector.extract_strided_slice %208 {offsets = [0, 96], sizes = [8, 32], strides = [1, 1]} : vector<8x128xf32> to vector<8x32xf32>
    %224 = arith.negf %223 : vector<8x32xf32>
    %225 = math.exp %224 : vector<8x32xf32>
    %cst_61 = arith.constant 1.000000e+00 : f32
    %226 = vector.broadcast %cst_61 : f32 to vector<8x32xf32>
    %227 = arith.addf %226, %225 : vector<8x32xf32>
    %228 = arith.divf %226, %227 : vector<8x32xf32>
    %229 = arith.mulf %220, %170 : vector<8x32xf32>
    %230 = arith.mulf %214, %222 : vector<8x32xf32>
    %231 = arith.addf %229, %230 : vector<8x32xf32>
    %232 = math.tanh %231 : vector<8x32xf32>
    %233 = arith.mulf %228, %232 : vector<8x32xf32>
    %234 = tpu.concatenate %233, %200 in 1 : vector<8x32xf32>, vector<8x32xf32> -> vector<8x64xf32>
    %cst_62 = arith.constant dense<0.000000e+00> : vector<8x128xf32>
    %235 = tpu.matmul %234, %15, %cst_62 {dimension_numbers = #tpu.dot_dimension_numbers<[1], [0], [0], [1], [0, 0, 1, 1], [], []>} : vector<8x64xf32>, vector<64x128xf32>, vector<8x128xf32> -> vector<8x128xf32>
    %236 = arith.addf %235, %13 : vector<8x128xf32>
    %237 = vector.extract_strided_slice %236 {offsets = [0, 0], sizes = [8, 32], strides = [1, 1]} : vector<8x128xf32> to vector<8x32xf32>
    %238 = arith.negf %237 : vector<8x32xf32>
    %239 = math.exp %238 : vector<8x32xf32>
    %cst_63 = arith.constant 1.000000e+00 : f32
    %240 = vector.broadcast %cst_63 : f32 to vector<8x32xf32>
    %241 = arith.addf %240, %239 : vector<8x32xf32>
    %242 = arith.divf %240, %241 : vector<8x32xf32>
    %243 = vector.extract_strided_slice %236 {offsets = [0, 32], sizes = [8, 32], strides = [1, 1]} : vector<8x128xf32> to vector<8x32xf32>
    %244 = arith.negf %243 : vector<8x32xf32>
    %245 = math.exp %244 : vector<8x32xf32>
    %cst_64 = arith.constant 1.000000e+00 : f32
    %246 = vector.broadcast %cst_64 : f32 to vector<8x32xf32>
    %247 = arith.addf %246, %245 : vector<8x32xf32>
    %248 = arith.divf %246, %247 : vector<8x32xf32>
    %249 = vector.extract_strided_slice %236 {offsets = [0, 64], sizes = [8, 32], strides = [1, 1]} : vector<8x128xf32> to vector<8x32xf32>
    %250 = math.tanh %249 : vector<8x32xf32>
    %251 = vector.extract_strided_slice %236 {offsets = [0, 96], sizes = [8, 32], strides = [1, 1]} : vector<8x128xf32> to vector<8x32xf32>
    %252 = arith.negf %251 : vector<8x32xf32>
    %253 = math.exp %252 : vector<8x32xf32>
    %cst_65 = arith.constant 1.000000e+00 : f32
    %254 = vector.broadcast %cst_65 : f32 to vector<8x32xf32>
    %255 = arith.addf %254, %253 : vector<8x32xf32>
    %256 = arith.divf %254, %255 : vector<8x32xf32>
    %257 = arith.mulf %248, %198 : vector<8x32xf32>
    %258 = arith.mulf %242, %250 : vector<8x32xf32>
    %259 = arith.addf %257, %258 : vector<8x32xf32>
    %260 = math.tanh %259 : vector<8x32xf32>
    %261 = arith.mulf %256, %260 : vector<8x32xf32>
    %262 = arith.index_cast %204 : i32 to index
    %c0_66 = arith.constant 0 : index
    %263 = vector.load %arg18[%262, %c0_66] : memref<64x32xf32, #tpu.memory_space<vmem>>, vector<8x32xf32>
    tpu.vector_store %arg18[%262, %c0_66], %261 {strides = array<i32>} : memref<64x32xf32, #tpu.memory_space<vmem>>, vector<8x32xf32>,
    %c4_i32 = arith.constant 4 : i32
    %c8_i32_67 = arith.constant 8 : i32
    %264 = arith.muli %c4_i32, %c8_i32_67 : i32
    %265 = tpu.assume_multiple %264, 8 : i32
    %266 = arith.index_cast %265 : i32 to index
    %c0_68 = arith.constant 0 : index
    %267 = vector.load %arg17[%266, %c0_68] : memref<64x128xf32, #tpu.memory_space<vmem>>, vector<8x128xf32>
    %cst_69 = arith.constant dense<0.000000e+00> : vector<8x128xf32>
    %268 = tpu.matmul %233, %14, %cst_69 {dimension_numbers = #tpu.dot_dimension_numbers<[1], [0], [0], [1], [0, 0, 1, 1], [], []>} : vector<8x32xf32>, vector<32x128xf32>, vector<8x128xf32> -> vector<8x128xf32>
    %269 = arith.addf %267, %268 : vector<8x128xf32>
    %270 = vector.extract_strided_slice %269 {offsets = [0, 0], sizes = [8, 32], strides = [1, 1]} : vector<8x128xf32> to vector<8x32xf32>
    %271 = arith.negf %270 : vector<8x32xf32>
    %272 = math.exp %271 : vector<8x32xf32>
    %cst_70 = arith.constant 1.000000e+00 : f32
    %273 = vector.broadcast %cst_70 : f32 to vector<8x32xf32>
    %274 = arith.addf %273, %272 : vector<8x32xf32>
    %275 = arith.divf %273, %274 : vector<8x32xf32>
    %276 = vector.extract_strided_slice %269 {offsets = [0, 32], sizes = [8, 32], strides = [1, 1]} : vector<8x128xf32> to vector<8x32xf32>
    %277 = arith.negf %276 : vector<8x32xf32>
    %278 = math.exp %277 : vector<8x32xf32>
    %cst_71 = arith.constant 1.000000e+00 : f32
    %279 = vector.broadcast %cst_71 : f32 to vector<8x32xf32>
    %280 = arith.addf %279, %278 : vector<8x32xf32>
    %281 = arith.divf %279, %280 : vector<8x32xf32>
    %282 = vector.extract_strided_slice %269 {offsets = [0, 64], sizes = [8, 32], strides = [1, 1]} : vector<8x128xf32> to vector<8x32xf32>
    %283 = math.tanh %282 : vector<8x32xf32>
    %284 = vector.extract_strided_slice %269 {offsets = [0, 96], sizes = [8, 32], strides = [1, 1]} : vector<8x128xf32> to vector<8x32xf32>
    %285 = arith.negf %284 : vector<8x32xf32>
    %286 = math.exp %285 : vector<8x32xf32>
    %cst_72 = arith.constant 1.000000e+00 : f32
    %287 = vector.broadcast %cst_72 : f32 to vector<8x32xf32>
    %288 = arith.addf %287, %286 : vector<8x32xf32>
    %289 = arith.divf %287, %288 : vector<8x32xf32>
    %290 = arith.mulf %281, %231 : vector<8x32xf32>
    %291 = arith.mulf %275, %283 : vector<8x32xf32>
    %292 = arith.addf %290, %291 : vector<8x32xf32>
    %293 = math.tanh %292 : vector<8x32xf32>
    %294 = arith.mulf %289, %293 : vector<8x32xf32>
    %295 = tpu.concatenate %294, %261 in 1 : vector<8x32xf32>, vector<8x32xf32> -> vector<8x64xf32>
    %cst_73 = arith.constant dense<0.000000e+00> : vector<8x128xf32>
    %296 = tpu.matmul %295, %15, %cst_73 {dimension_numbers = #tpu.dot_dimension_numbers<[1], [0], [0], [1], [0, 0, 1, 1], [], []>} : vector<8x64xf32>, vector<64x128xf32>, vector<8x128xf32> -> vector<8x128xf32>
    %297 = arith.addf %296, %13 : vector<8x128xf32>
    %298 = vector.extract_strided_slice %297 {offsets = [0, 0], sizes = [8, 32], strides = [1, 1]} : vector<8x128xf32> to vector<8x32xf32>
    %299 = arith.negf %298 : vector<8x32xf32>
    %300 = math.exp %299 : vector<8x32xf32>
    %cst_74 = arith.constant 1.000000e+00 : f32
    %301 = vector.broadcast %cst_74 : f32 to vector<8x32xf32>
    %302 = arith.addf %301, %300 : vector<8x32xf32>
    %303 = arith.divf %301, %302 : vector<8x32xf32>
    %304 = vector.extract_strided_slice %297 {offsets = [0, 32], sizes = [8, 32], strides = [1, 1]} : vector<8x128xf32> to vector<8x32xf32>
    %305 = arith.negf %304 : vector<8x32xf32>
    %306 = math.exp %305 : vector<8x32xf32>
    %cst_75 = arith.constant 1.000000e+00 : f32
    %307 = vector.broadcast %cst_75 : f32 to vector<8x32xf32>
    %308 = arith.addf %307, %306 : vector<8x32xf32>
    %309 = arith.divf %307, %308 : vector<8x32xf32>
    %310 = vector.extract_strided_slice %297 {offsets = [0, 64], sizes = [8, 32], strides = [1, 1]} : vector<8x128xf32> to vector<8x32xf32>
    %311 = math.tanh %310 : vector<8x32xf32>
    %312 = vector.extract_strided_slice %297 {offsets = [0, 96], sizes = [8, 32], strides = [1, 1]} : vector<8x128xf32> to vector<8x32xf32>
    %313 = arith.negf %312 : vector<8x32xf32>
    %314 = math.exp %313 : vector<8x32xf32>
    %cst_76 = arith.constant 1.000000e+00 : f32
    %315 = vector.broadcast %cst_76 : f32 to vector<8x32xf32>
    %316 = arith.addf %315, %314 : vector<8x32xf32>
    %317 = arith.divf %315, %316 : vector<8x32xf32>
    %318 = arith.mulf %309, %259 : vector<8x32xf32>
    %319 = arith.mulf %303, %311 : vector<8x32xf32>
    %320 = arith.addf %318, %319 : vector<8x32xf32>
    %321 = math.tanh %320 : vector<8x32xf32>
    %322 = arith.mulf %317, %321 : vector<8x32xf32>
    %323 = arith.index_cast %265 : i32 to index
    %c0_77 = arith.constant 0 : index
    %324 = vector.load %arg18[%323, %c0_77] : memref<64x32xf32, #tpu.memory_space<vmem>>, vector<8x32xf32>
    tpu.vector_store %arg18[%323, %c0_77], %322 {strides = array<i32>} : memref<64x32xf32, #tpu.memory_space<vmem>>, vector<8x32xf32>,
    %c5_i32 = arith.constant 5 : i32
    %c8_i32_78 = arith.constant 8 : i32
    %325 = arith.muli %c5_i32, %c8_i32_78 : i32
    %326 = tpu.assume_multiple %325, 8 : i32
    %327 = arith.index_cast %326 : i32 to index
    %c0_79 = arith.constant 0 : index
    %328 = vector.load %arg17[%327, %c0_79] : memref<64x128xf32, #tpu.memory_space<vmem>>, vector<8x128xf32>
    %cst_80 = arith.constant dense<0.000000e+00> : vector<8x128xf32>
    %329 = tpu.matmul %294, %14, %cst_80 {dimension_numbers = #tpu.dot_dimension_numbers<[1], [0], [0], [1], [0, 0, 1, 1], [], []>} : vector<8x32xf32>, vector<32x128xf32>, vector<8x128xf32> -> vector<8x128xf32>
    %330 = arith.addf %328, %329 : vector<8x128xf32>
    %331 = vector.extract_strided_slice %330 {offsets = [0, 0], sizes = [8, 32], strides = [1, 1]} : vector<8x128xf32> to vector<8x32xf32>
    %332 = arith.negf %331 : vector<8x32xf32>
    %333 = math.exp %332 : vector<8x32xf32>
    %cst_81 = arith.constant 1.000000e+00 : f32
    %334 = vector.broadcast %cst_81 : f32 to vector<8x32xf32>
    %335 = arith.addf %334, %333 : vector<8x32xf32>
    %336 = arith.divf %334, %335 : vector<8x32xf32>
    %337 = vector.extract_strided_slice %330 {offsets = [0, 32], sizes = [8, 32], strides = [1, 1]} : vector<8x128xf32> to vector<8x32xf32>
    %338 = arith.negf %337 : vector<8x32xf32>
    %339 = math.exp %338 : vector<8x32xf32>
    %cst_82 = arith.constant 1.000000e+00 : f32
    %340 = vector.broadcast %cst_82 : f32 to vector<8x32xf32>
    %341 = arith.addf %340, %339 : vector<8x32xf32>
    %342 = arith.divf %340, %341 : vector<8x32xf32>
    %343 = vector.extract_strided_slice %330 {offsets = [0, 64], sizes = [8, 32], strides = [1, 1]} : vector<8x128xf32> to vector<8x32xf32>
    %344 = math.tanh %343 : vector<8x32xf32>
    %345 = vector.extract_strided_slice %330 {offsets = [0, 96], sizes = [8, 32], strides = [1, 1]} : vector<8x128xf32> to vector<8x32xf32>
    %346 = arith.negf %345 : vector<8x32xf32>
    %347 = math.exp %346 : vector<8x32xf32>
    %cst_83 = arith.constant 1.000000e+00 : f32
    %348 = vector.broadcast %cst_83 : f32 to vector<8x32xf32>
    %349 = arith.addf %348, %347 : vector<8x32xf32>
    %350 = arith.divf %348, %349 : vector<8x32xf32>
    %351 = arith.mulf %342, %292 : vector<8x32xf32>
    %352 = arith.mulf %336, %344 : vector<8x32xf32>
    %353 = arith.addf %351, %352 : vector<8x32xf32>
    %354 = math.tanh %353 : vector<8x32xf32>
    %355 = arith.mulf %350, %354 : vector<8x32xf32>
    %356 = tpu.concatenate %355, %322 in 1 : vector<8x32xf32>, vector<8x32xf32> -> vector<8x64xf32>
    %cst_84 = arith.constant dense<0.000000e+00> : vector<8x128xf32>
    %357 = tpu.matmul %356, %15, %cst_84 {dimension_numbers = #tpu.dot_dimension_numbers<[1], [0], [0], [1], [0, 0, 1, 1], [], []>} : vector<8x64xf32>, vector<64x128xf32>, vector<8x128xf32> -> vector<8x128xf32>
    %358 = arith.addf %357, %13 : vector<8x128xf32>
    %359 = vector.extract_strided_slice %358 {offsets = [0, 0], sizes = [8, 32], strides = [1, 1]} : vector<8x128xf32> to vector<8x32xf32>
    %360 = arith.negf %359 : vector<8x32xf32>
    %361 = math.exp %360 : vector<8x32xf32>
    %cst_85 = arith.constant 1.000000e+00 : f32
    %362 = vector.broadcast %cst_85 : f32 to vector<8x32xf32>
    %363 = arith.addf %362, %361 : vector<8x32xf32>
    %364 = arith.divf %362, %363 : vector<8x32xf32>
    %365 = vector.extract_strided_slice %358 {offsets = [0, 32], sizes = [8, 32], strides = [1, 1]} : vector<8x128xf32> to vector<8x32xf32>
    %366 = arith.negf %365 : vector<8x32xf32>
    %367 = math.exp %366 : vector<8x32xf32>
    %cst_86 = arith.constant 1.000000e+00 : f32
    %368 = vector.broadcast %cst_86 : f32 to vector<8x32xf32>
    %369 = arith.addf %368, %367 : vector<8x32xf32>
    %370 = arith.divf %368, %369 : vector<8x32xf32>
    %371 = vector.extract_strided_slice %358 {offsets = [0, 64], sizes = [8, 32], strides = [1, 1]} : vector<8x128xf32> to vector<8x32xf32>
    %372 = math.tanh %371 : vector<8x32xf32>
    %373 = vector.extract_strided_slice %358 {offsets = [0, 96], sizes = [8, 32], strides = [1, 1]} : vector<8x128xf32> to vector<8x32xf32>
    %374 = arith.negf %373 : vector<8x32xf32>
    %375 = math.exp %374 : vector<8x32xf32>
    %cst_87 = arith.constant 1.000000e+00 : f32
    %376 = vector.broadcast %cst_87 : f32 to vector<8x32xf32>
    %377 = arith.addf %376, %375 : vector<8x32xf32>
    %378 = arith.divf %376, %377 : vector<8x32xf32>
    %379 = arith.mulf %370, %320 : vector<8x32xf32>
    %380 = arith.mulf %364, %372 : vector<8x32xf32>
    %381 = arith.addf %379, %380 : vector<8x32xf32>
    %382 = math.tanh %381 : vector<8x32xf32>
    %383 = arith.mulf %378, %382 : vector<8x32xf32>
    %384 = arith.index_cast %326 : i32 to index
    %c0_88 = arith.constant 0 : index
    %385 = vector.load %arg18[%384, %c0_88] : memref<64x32xf32, #tpu.memory_space<vmem>>, vector<8x32xf32>
    tpu.vector_store %arg18[%384, %c0_88], %383 {strides = array<i32>} : memref<64x32xf32, #tpu.memory_space<vmem>>, vector<8x32xf32>,
    %c6_i32 = arith.constant 6 : i32
    %c8_i32_89 = arith.constant 8 : i32
    %386 = arith.muli %c6_i32, %c8_i32_89 : i32
    %387 = tpu.assume_multiple %386, 8 : i32
    %388 = arith.index_cast %387 : i32 to index
    %c0_90 = arith.constant 0 : index
    %389 = vector.load %arg17[%388, %c0_90] : memref<64x128xf32, #tpu.memory_space<vmem>>, vector<8x128xf32>
    %cst_91 = arith.constant dense<0.000000e+00> : vector<8x128xf32>
    %390 = tpu.matmul %355, %14, %cst_91 {dimension_numbers = #tpu.dot_dimension_numbers<[1], [0], [0], [1], [0, 0, 1, 1], [], []>} : vector<8x32xf32>, vector<32x128xf32>, vector<8x128xf32> -> vector<8x128xf32>
    %391 = arith.addf %389, %390 : vector<8x128xf32>
    %392 = vector.extract_strided_slice %391 {offsets = [0, 0], sizes = [8, 32], strides = [1, 1]} : vector<8x128xf32> to vector<8x32xf32>
    %393 = arith.negf %392 : vector<8x32xf32>
    %394 = math.exp %393 : vector<8x32xf32>
    %cst_92 = arith.constant 1.000000e+00 : f32
    %395 = vector.broadcast %cst_92 : f32 to vector<8x32xf32>
    %396 = arith.addf %395, %394 : vector<8x32xf32>
    %397 = arith.divf %395, %396 : vector<8x32xf32>
    %398 = vector.extract_strided_slice %391 {offsets = [0, 32], sizes = [8, 32], strides = [1, 1]} : vector<8x128xf32> to vector<8x32xf32>
    %399 = arith.negf %398 : vector<8x32xf32>
    %400 = math.exp %399 : vector<8x32xf32>
    %cst_93 = arith.constant 1.000000e+00 : f32
    %401 = vector.broadcast %cst_93 : f32 to vector<8x32xf32>
    %402 = arith.addf %401, %400 : vector<8x32xf32>
    %403 = arith.divf %401, %402 : vector<8x32xf32>
    %404 = vector.extract_strided_slice %391 {offsets = [0, 64], sizes = [8, 32], strides = [1, 1]} : vector<8x128xf32> to vector<8x32xf32>
    %405 = math.tanh %404 : vector<8x32xf32>
    %406 = vector.extract_strided_slice %391 {offsets = [0, 96], sizes = [8, 32], strides = [1, 1]} : vector<8x128xf32> to vector<8x32xf32>
    %407 = arith.negf %406 : vector<8x32xf32>
    %408 = math.exp %407 : vector<8x32xf32>
    %cst_94 = arith.constant 1.000000e+00 : f32
    %409 = vector.broadcast %cst_94 : f32 to vector<8x32xf32>
    %410 = arith.addf %409, %408 : vector<8x32xf32>
    %411 = arith.divf %409, %410 : vector<8x32xf32>
    %412 = arith.mulf %403, %353 : vector<8x32xf32>
    %413 = arith.mulf %397, %405 : vector<8x32xf32>
    %414 = arith.addf %412, %413 : vector<8x32xf32>
    %415 = math.tanh %414 : vector<8x32xf32>
    %416 = arith.mulf %411, %415 : vector<8x32xf32>
    %417 = tpu.concatenate %416, %383 in 1 : vector<8x32xf32>, vector<8x32xf32> -> vector<8x64xf32>
    %cst_95 = arith.constant dense<0.000000e+00> : vector<8x128xf32>
    %418 = tpu.matmul %417, %15, %cst_95 {dimension_numbers = #tpu.dot_dimension_numbers<[1], [0], [0], [1], [0, 0, 1, 1], [], []>} : vector<8x64xf32>, vector<64x128xf32>, vector<8x128xf32> -> vector<8x128xf32>
    %419 = arith.addf %418, %13 : vector<8x128xf32>
    %420 = vector.extract_strided_slice %419 {offsets = [0, 0], sizes = [8, 32], strides = [1, 1]} : vector<8x128xf32> to vector<8x32xf32>
    %421 = arith.negf %420 : vector<8x32xf32>
    %422 = math.exp %421 : vector<8x32xf32>
    %cst_96 = arith.constant 1.000000e+00 : f32
    %423 = vector.broadcast %cst_96 : f32 to vector<8x32xf32>
    %424 = arith.addf %423, %422 : vector<8x32xf32>
    %425 = arith.divf %423, %424 : vector<8x32xf32>
    %426 = vector.extract_strided_slice %419 {offsets = [0, 32], sizes = [8, 32], strides = [1, 1]} : vector<8x128xf32> to vector<8x32xf32>
    %427 = arith.negf %426 : vector<8x32xf32>
    %428 = math.exp %427 : vector<8x32xf32>
    %cst_97 = arith.constant 1.000000e+00 : f32
    %429 = vector.broadcast %cst_97 : f32 to vector<8x32xf32>
    %430 = arith.addf %429, %428 : vector<8x32xf32>
    %431 = arith.divf %429, %430 : vector<8x32xf32>
    %432 = vector.extract_strided_slice %419 {offsets = [0, 64], sizes = [8, 32], strides = [1, 1]} : vector<8x128xf32> to vector<8x32xf32>
    %433 = math.tanh %432 : vector<8x32xf32>
    %434 = vector.extract_strided_slice %419 {offsets = [0, 96], sizes = [8, 32], strides = [1, 1]} : vector<8x128xf32> to vector<8x32xf32>
    %435 = arith.negf %434 : vector<8x32xf32>
    %436 = math.exp %435 : vector<8x32xf32>
    %cst_98 = arith.constant 1.000000e+00 : f32
    %437 = vector.broadcast %cst_98 : f32 to vector<8x32xf32>
    %438 = arith.addf %437, %436 : vector<8x32xf32>
    %439 = arith.divf %437, %438 : vector<8x32xf32>
    %440 = arith.mulf %431, %381 : vector<8x32xf32>
    %441 = arith.mulf %425, %433 : vector<8x32xf32>
    %442 = arith.addf %440, %441 : vector<8x32xf32>
    %443 = math.tanh %442 : vector<8x32xf32>
    %444 = arith.mulf %439, %443 : vector<8x32xf32>
    %445 = arith.index_cast %387 : i32 to index
    %c0_99 = arith.constant 0 : index
    %446 = vector.load %arg18[%445, %c0_99] : memref<64x32xf32, #tpu.memory_space<vmem>>, vector<8x32xf32>
    tpu.vector_store %arg18[%445, %c0_99], %444 {strides = array<i32>} : memref<64x32xf32, #tpu.memory_space<vmem>>, vector<8x32xf32>,
    %c7_i32 = arith.constant 7 : i32
    %c8_i32_100 = arith.constant 8 : i32
    %447 = arith.muli %c7_i32, %c8_i32_100 : i32
    %448 = tpu.assume_multiple %447, 8 : i32
    %449 = arith.index_cast %448 : i32 to index
    %c0_101 = arith.constant 0 : index
    %450 = vector.load %arg17[%449, %c0_101] : memref<64x128xf32, #tpu.memory_space<vmem>>, vector<8x128xf32>
    %cst_102 = arith.constant dense<0.000000e+00> : vector<8x128xf32>
    %451 = tpu.matmul %416, %14, %cst_102 {dimension_numbers = #tpu.dot_dimension_numbers<[1], [0], [0], [1], [0, 0, 1, 1], [], []>} : vector<8x32xf32>, vector<32x128xf32>, vector<8x128xf32> -> vector<8x128xf32>
    %452 = arith.addf %450, %451 : vector<8x128xf32>
    %453 = vector.extract_strided_slice %452 {offsets = [0, 0], sizes = [8, 32], strides = [1, 1]} : vector<8x128xf32> to vector<8x32xf32>
    %454 = arith.negf %453 : vector<8x32xf32>
    %455 = math.exp %454 : vector<8x32xf32>
    %cst_103 = arith.constant 1.000000e+00 : f32
    %456 = vector.broadcast %cst_103 : f32 to vector<8x32xf32>
    %457 = arith.addf %456, %455 : vector<8x32xf32>
    %458 = arith.divf %456, %457 : vector<8x32xf32>
    %459 = vector.extract_strided_slice %452 {offsets = [0, 32], sizes = [8, 32], strides = [1, 1]} : vector<8x128xf32> to vector<8x32xf32>
    %460 = arith.negf %459 : vector<8x32xf32>
    %461 = math.exp %460 : vector<8x32xf32>
    %cst_104 = arith.constant 1.000000e+00 : f32
    %462 = vector.broadcast %cst_104 : f32 to vector<8x32xf32>
    %463 = arith.addf %462, %461 : vector<8x32xf32>
    %464 = arith.divf %462, %463 : vector<8x32xf32>
    %465 = vector.extract_strided_slice %452 {offsets = [0, 64], sizes = [8, 32], strides = [1, 1]} : vector<8x128xf32> to vector<8x32xf32>
    %466 = math.tanh %465 : vector<8x32xf32>
    %467 = vector.extract_strided_slice %452 {offsets = [0, 96], sizes = [8, 32], strides = [1, 1]} : vector<8x128xf32> to vector<8x32xf32>
    %468 = arith.negf %467 : vector<8x32xf32>
    %469 = math.exp %468 : vector<8x32xf32>
    %cst_105 = arith.constant 1.000000e+00 : f32
    %470 = vector.broadcast %cst_105 : f32 to vector<8x32xf32>
    %471 = arith.addf %470, %469 : vector<8x32xf32>
    %472 = arith.divf %470, %471 : vector<8x32xf32>
    %473 = arith.mulf %464, %414 : vector<8x32xf32>
    %474 = arith.mulf %458, %466 : vector<8x32xf32>
    %475 = arith.addf %473, %474 : vector<8x32xf32>
    %476 = math.tanh %475 : vector<8x32xf32>
    %477 = arith.mulf %472, %476 : vector<8x32xf32>
    %478 = tpu.concatenate %477, %444 in 1 : vector<8x32xf32>, vector<8x32xf32> -> vector<8x64xf32>
    %cst_106 = arith.constant dense<0.000000e+00> : vector<8x128xf32>
    %479 = tpu.matmul %478, %15, %cst_106 {dimension_numbers = #tpu.dot_dimension_numbers<[1], [0], [0], [1], [0, 0, 1, 1], [], []>} : vector<8x64xf32>, vector<64x128xf32>, vector<8x128xf32> -> vector<8x128xf32>
    %480 = arith.addf %479, %13 : vector<8x128xf32>
    %481 = vector.extract_strided_slice %480 {offsets = [0, 0], sizes = [8, 32], strides = [1, 1]} : vector<8x128xf32> to vector<8x32xf32>
    %482 = arith.negf %481 : vector<8x32xf32>
    %483 = math.exp %482 : vector<8x32xf32>
    %cst_107 = arith.constant 1.000000e+00 : f32
    %484 = vector.broadcast %cst_107 : f32 to vector<8x32xf32>
    %485 = arith.addf %484, %483 : vector<8x32xf32>
    %486 = arith.divf %484, %485 : vector<8x32xf32>
    %487 = vector.extract_strided_slice %480 {offsets = [0, 32], sizes = [8, 32], strides = [1, 1]} : vector<8x128xf32> to vector<8x32xf32>
    %488 = arith.negf %487 : vector<8x32xf32>
    %489 = math.exp %488 : vector<8x32xf32>
    %cst_108 = arith.constant 1.000000e+00 : f32
    %490 = vector.broadcast %cst_108 : f32 to vector<8x32xf32>
    %491 = arith.addf %490, %489 : vector<8x32xf32>
    %492 = arith.divf %490, %491 : vector<8x32xf32>
    %493 = vector.extract_strided_slice %480 {offsets = [0, 64], sizes = [8, 32], strides = [1, 1]} : vector<8x128xf32> to vector<8x32xf32>
    %494 = math.tanh %493 : vector<8x32xf32>
    %495 = vector.extract_strided_slice %480 {offsets = [0, 96], sizes = [8, 32], strides = [1, 1]} : vector<8x128xf32> to vector<8x32xf32>
    %496 = arith.negf %495 : vector<8x32xf32>
    %497 = math.exp %496 : vector<8x32xf32>
    %cst_109 = arith.constant 1.000000e+00 : f32
    %498 = vector.broadcast %cst_109 : f32 to vector<8x32xf32>
    %499 = arith.addf %498, %497 : vector<8x32xf32>
    %500 = arith.divf %498, %499 : vector<8x32xf32>
    %501 = arith.mulf %492, %442 : vector<8x32xf32>
    %502 = arith.mulf %486, %494 : vector<8x32xf32>
    %503 = arith.addf %501, %502 : vector<8x32xf32>
    %504 = math.tanh %503 : vector<8x32xf32>
    %505 = arith.mulf %500, %504 : vector<8x32xf32>
    %506 = arith.index_cast %448 : i32 to index
    %c0_110 = arith.constant 0 : index
    %507 = vector.load %arg18[%506, %c0_110] : memref<64x32xf32, #tpu.memory_space<vmem>>, vector<8x32xf32>
    tpu.vector_store %arg18[%506, %c0_110], %505 {strides = array<i32>} : memref<64x32xf32, #tpu.memory_space<vmem>>, vector<8x32xf32>,
    %c8_i32_111 = arith.constant 8 : i32
    %c0_112 = arith.constant 0 : index
    %c0_113 = arith.constant 0 : index
    %508 = vector.load %arg13[%c0_112, %c0_113] : memref<8x32xf32, #tpu.memory_space<vmem>>, vector<8x32xf32>
    tpu.vector_store %arg13[%c0_112, %c0_113], %477 {strides = array<i32>} : memref<8x32xf32, #tpu.memory_space<vmem>>, vector<8x32xf32>,
    %c0_114 = arith.constant 0 : index
    %c0_115 = arith.constant 0 : index
    %509 = vector.load %arg14[%c0_114, %c0_115] : memref<8x32xf32, #tpu.memory_space<vmem>>, vector<8x32xf32>
    tpu.vector_store %arg14[%c0_114, %c0_115], %475 {strides = array<i32>} : memref<8x32xf32, #tpu.memory_space<vmem>>, vector<8x32xf32>,
    %c0_116 = arith.constant 0 : index
    %c0_117 = arith.constant 0 : index
    %510 = vector.load %arg15[%c0_116, %c0_117] : memref<8x32xf32, #tpu.memory_space<vmem>>, vector<8x32xf32>
    tpu.vector_store %arg15[%c0_116, %c0_117], %505 {strides = array<i32>} : memref<8x32xf32, #tpu.memory_space<vmem>>, vector<8x32xf32>,
    %c0_118 = arith.constant 0 : index
    %c0_119 = arith.constant 0 : index
    %511 = vector.load %arg16[%c0_118, %c0_119] : memref<8x32xf32, #tpu.memory_space<vmem>>, vector<8x32xf32>
    tpu.vector_store %arg16[%c0_118, %c0_119], %503 {strides = array<i32>} : memref<8x32xf32, #tpu.memory_space<vmem>>, vector<8x32xf32>,
    %c0_120 = arith.constant 0 : index
    %c0_121 = arith.constant 0 : index
    %512 = vector.load %arg18[%c0_120, %c0_121] : memref<64x32xf32, #tpu.memory_space<vmem>>, vector<64x32xf32>
    %c0_122 = arith.constant 0 : index
    %c0_123 = arith.constant 0 : index
    %513 = vector.load %arg8[%c0_122, %c0_123] : memref<32x32xf32, #tpu.memory_space<vmem>>, vector<32x32xf32>
    %cst_124 = arith.constant dense<0.000000e+00> : vector<64x32xf32>
    %514 = tpu.matmul %512, %513, %cst_124 {dimension_numbers = #tpu.dot_dimension_numbers<[1], [0], [0], [1], [0, 0, 1, 1], [], []>} : vector<64x32xf32>, vector<32x32xf32>, vector<64x32xf32> -> vector<64x32xf32>
    %c0_125 = arith.constant 0 : index
    %c0_126 = arith.constant 0 : index
    %515 = vector.load %arg9[%c0_125, %c0_126] : memref<1x32xf32, #tpu.memory_space<vmem>>, vector<1x32xf32>
    %516 = vector.broadcast %515 : vector<1x32xf32> to vector<64x32xf32>
    %517 = arith.addf %514, %516 : vector<64x32xf32>
    %518 = math.tanh %517 : vector<64x32xf32>
    %c0_127 = arith.constant 0 : index
    %c0_128 = arith.constant 0 : index
    %519 = vector.load %arg10[%c0_127, %c0_128] : memref<32x128xf32, #tpu.memory_space<vmem>>, vector<32x128xf32>
    %cst_129 = arith.constant dense<0.000000e+00> : vector<64x128xf32>
    %520 = tpu.matmul %518, %519, %cst_129 {dimension_numbers = #tpu.dot_dimension_numbers<[1], [0], [0], [1], [0, 0, 1, 1], [], []>} : vector<64x32xf32>, vector<32x128xf32>, vector<64x128xf32> -> vector<64x128xf32>
    %c0_130 = arith.constant 0 : index
    %c0_131 = arith.constant 0 : index
    %521 = vector.load %arg11[%c0_130, %c0_131] : memref<1x128xf32, #tpu.memory_space<vmem>>, vector<1x128xf32>
    %522 = vector.broadcast %521 : vector<1x128xf32> to vector<64x128xf32>
    %523 = arith.addf %520, %522 : vector<64x128xf32>
    %c0_132 = arith.constant 0 : index
    %c0_133 = arith.constant 0 : index
    %c0_134 = arith.constant 0 : index
    %524 = vector.load %arg12[%c0_132, %c0_133, %c0_134] : memref<1x64x128xf32, #tpu.memory_space<vmem>>, vector<1x64x128xf32>
    %525 = vector.shape_cast %524 : vector<1x64x128xf32> to vector<64x128xf32>
    %526 = vector.shape_cast %523 : vector<64x128xf32> to vector<1x64x128xf32>
    tpu.vector_store %arg12[%c0_132, %c0_133, %c0_134], %526 {strides = array<i32>} : memref<1x64x128xf32, #tpu.memory_space<vmem>>, vector<1x64x128xf32>,
    return
  }
  func.func @transform_0(%arg0: i32, %arg1: i32) -> (i32, i32, i32) {
    %c0_i32 = arith.constant 0 : i32
    %c0_i32_0 = arith.constant 0 : i32
    return %arg0, %arg1, %c0_i32 : i32, i32, i32
  }
  func.func @transform_1(%arg0: i32, %arg1: i32) -> (i32, i32) {
    %c0_i32 = arith.constant 0 : i32
    %c0_i32_0 = arith.constant 0 : i32
    %c0_i32_1 = arith.constant 0 : i32
    return %c0_i32, %c0_i32_0 : i32, i32
  }
  func.func @transform_2(%arg0: i32, %arg1: i32) -> (i32, i32) {
    %c0_i32 = arith.constant 0 : i32
    %c0_i32_0 = arith.constant 0 : i32
    %c0_i32_1 = arith.constant 0 : i32
    return %c0_i32, %c0_i32_0 : i32, i32
  }
  func.func @transform_3(%arg0: i32, %arg1: i32) -> (i32, i32) {
    %c0_i32 = arith.constant 0 : i32
    %c0_i32_0 = arith.constant 0 : i32
    %c0_i32_1 = arith.constant 0 : i32
    return %c0_i32, %c0_i32_0 : i32, i32
  }
  func.func @transform_4(%arg0: i32, %arg1: i32) -> (i32, i32) {
    %c0_i32 = arith.constant 0 : i32
    %c0_i32_0 = arith.constant 0 : i32
    %c0_i32_1 = arith.constant 0 : i32
    return %c0_i32, %c0_i32_0 : i32, i32
  }
  func.func @transform_5(%arg0: i32, %arg1: i32) -> (i32, i32) {
    %c0_i32 = arith.constant 0 : i32
    %c0_i32_0 = arith.constant 0 : i32
    %c0_i32_1 = arith.constant 0 : i32
    return %c0_i32, %c0_i32_0 : i32, i32
  }
  func.func @transform_6(%arg0: i32, %arg1: i32) -> (i32, i32) {
    %c0_i32 = arith.constant 0 : i32
    %c0_i32_0 = arith.constant 0 : i32
    %c0_i32_1 = arith.constant 0 : i32
    return %c0_i32, %c0_i32_0 : i32, i32
  }
  func.func @transform_7(%arg0: i32, %arg1: i32) -> (i32, i32) {
    %c0_i32 = arith.constant 0 : i32
    %c0_i32_0 = arith.constant 0 : i32
    %c0_i32_1 = arith.constant 0 : i32
    return %c0_i32, %c0_i32_0 : i32, i32
  }
  func.func @transform_8(%arg0: i32, %arg1: i32) -> (i32, i32) {
    %c0_i32 = arith.constant 0 : i32
    %c0_i32_0 = arith.constant 0 : i32
    %c0_i32_1 = arith.constant 0 : i32
    return %c0_i32, %c0_i32_0 : i32, i32
  }
  func.func @transform_9(%arg0: i32, %arg1: i32) -> (i32, i32) {
    %c0_i32 = arith.constant 0 : i32
    %c0_i32_0 = arith.constant 0 : i32
    %c0_i32_1 = arith.constant 0 : i32
    return %c0_i32, %c0_i32_0 : i32, i32
  }
  func.func @transform_10(%arg0: i32, %arg1: i32) -> (i32, i32, i32) {
    %c0_i32 = arith.constant 0 : i32
    %c0_i32_0 = arith.constant 0 : i32
    return %arg0, %arg1, %c0_i32 : i32, i32, i32
  }
}

</mosaic_0001>

<bundles_post_ra>
// kernel: tpu_custom_call.1
= control target key start
LH: loop header
LB: loop body
LE: loop exit
PB: predicated region body
PF: predicated region fallthrough
CT: control target
= control target key end

     0   :  { %15 = vsyncpa [#allocation9], 0  ;;  %s3876_s0 = inlined_call_operand.vmem [shape: f32[1,64,3], index: 0, kind: input, shape index: {}]   ;;  %s3877_s1 = inlined_call_operand.hbm [shape: f32[3,128], index: 1, kind: input, shape index: {}]   ;;  %s3878_s2 = inlined_call_operand.hbm [shape: f32[32,128], index: 2, kind: input, shape index: {}]   ;;  %s3879_s3 = inlined_call_operand.vmem [shape: f32[1,128], index: 3, kind: input, shape index: {}]   ;;  %s3880_s4 = inlined_call_operand.vmem [shape: f32[64,128], index: 4, kind: input, shape index: {}]   ;;  %s3881_s5 = inlined_call_operand.hbm [shape: f32[1,128], index: 5, kind: input, shape index: {}]   ;;  %s3882_s6 = inlined_call_operand.hbm [shape: f32[32,32], index: 6, kind: input, shape index: {}]   ;;  %s3883_s7 = inlined_call_operand.hbm [shape: f32[1,32], index: 7, kind: input, shape index: {}]   ;;  %s3884_s8 = inlined_call_operand.vmem [shape: f32[32,128], index: 8, kind: input, shape index: {}]   ;;  %s3885_s9 = inlined_call_operand.vmem [shape: f32[1,128], index: 9, kind: input, shape index: {}]   ;;  %s3886_s10 = inlined_call_operand.hbm [shape: f32[1,64,128], index: 10, kind: output, shape index: {}]  }
   0x1   :  { %16 = vsyncpa [#allocation12], 0 }
   0x2   :  { %17 = vsyncpa [#allocation15], 0 }
   0x3   :  { %18 = vsyncpa [#allocation10], 0  ;;  %s3271_s13 = smov [#allocation11]   ;;  %s3131_s17 = scalar_lea.hbm %s3878_s2, 512 }
   0x4   :  { %s36_s14 = sshll.u32 %s3271_s13, 4  ;;  %p3132_p0 = scmp.ne.s32.totalorder %s3878_s2, %s3131_s17  ;;  %s37_s14 = int_to_ptr.vmem [resolvable:$true] %s36_s14 }
   0x5   :  { %p3135_p1 = scmp.lt.u32.totalorder %s3131_s17, %s3878_s2 }
   0x7   :  { %p3137_p2 = pnand %p3135_p1, %p3132_p0 }
   0x9   :  { %3140 = shalt.err (!%p3137_p2)
}
   0xa   :  { %s3141_s22 = scalar_lea.vmem %s37_s14, 512  ;;  %p3146_p4 = scmp.lt.s32.totalorder %s37_s14, %s37_s14 }
   0xb   :  { %p3142_p3 = scmp.ne.s32.totalorder %s37_s14, %s3141_s22  ;;  %p3147_p5 = scmp.lt.s32.totalorder %s3141_s22, %s3141_s22 }
   0xd   :  { %p3148_p6 = por %p3147_p5, %p3146_p4 }
   0xf   :  { %p3149_p7 = pnand %p3148_p6, %p3142_p3 }
  0x11   :  { %3152 = shalt.err (!%p3149_p7)
}
  0x12   :  { %s3272_s23 = smov 128   ;;  %s3273_s24 = smov 8  }
  0x13   :  { %42 = dma.hbm_to_vmem [thread:$0]  %s3878_s2, 512, %s37_s14, [#allocation12], %s3272_s23, %s3272_s23, %s3273_s24  }
  0x14   :  { %s3274_s27 = smov [#allocation14]   ;;  %s3275_s29 = smov [#allocation8]  }
  0x15   :  { %s62_s28 = sshll.u32 %s3274_s27, 4  ;;  %s27_s30 = sshll.u32 %s3275_s29, 4  ;;  %s63_s28 = int_to_ptr.vmem [resolvable:$true] %s62_s28  ;;  %s28_s30 = int_to_ptr.vmem [resolvable:$true] %s27_s30 }
  0x16   :  { %s3153_s13 = scalar_lea.hbm %s3882_s6, 512 }
  0x17   :  { %p3154_p8 = scmp.ne.s32.totalorder %s3882_s6, %s3153_s13  ;;  %p3157_p9 = scmp.lt.u32.totalorder %s3153_s13, %s3882_s6 }
  0x19   :  { %p3159_p10 = pnand %p3157_p9, %p3154_p8 }
  0x1b   :  { %3162 = shalt.err (!%p3159_p10)
}
  0x1c   :  { %s3163_s2 = scalar_lea.vmem %s63_s28, 512  ;;  %p3168_p12 = scmp.lt.s32.totalorder %s63_s28, %s63_s28 }
  0x1d   :  { %p3164_p11 = scmp.ne.s32.totalorder %s63_s28, %s3163_s2  ;;  %p3169_p13 = scmp.lt.s32.totalorder %s3163_s2, %s3163_s2 }
  0x1f   :  { %p3170_p0 = por %p3169_p13, %p3168_p12 }
  0x21   :  { %p3171_p1 = pnand %p3170_p0, %p3164_p11 }
  0x23   :  { %3174 = shalt.err (!%p3171_p1)
}
  0x24   :  { %68 = dma.hbm_to_vmem [thread:$0]  %s3882_s6, 512, %s63_s28, [#allocation15], %s3272_s23, %s3272_s23, %s3273_s24  }
  0x25   :  { %s3175_s22 = scalar_lea.hbm %s3877_s1, 64 }
  0x26   :  { %p3176_p2 = scmp.ne.s32.totalorder %s3877_s1, %s3175_s22  ;;  %p3179_p3 = scmp.lt.u32.totalorder %s3175_s22, %s3877_s1 }
  0x28   :  { %p3181_p4 = pnand %p3179_p3, %p3176_p2 }
  0x2a   :  { %3184 = shalt.err (!%p3181_p4)
}
  0x2b   :  { %s3185_s11 = scalar_lea.vmem %s28_s30, 64  ;;  %p3190_p6 = scmp.lt.s32.totalorder %s28_s30, %s28_s30 }
  0x2c   :  { %p3186_p5 = scmp.ne.s32.totalorder %s28_s30, %s3185_s11  ;;  %p3191_p7 = scmp.lt.s32.totalorder %s3185_s11, %s3185_s11 }
  0x2e   :  { %p3192_p8 = por %p3191_p7, %p3190_p6 }
  0x30   :  { %p3193_p9 = pnand %p3192_p8, %p3186_p5 }
  0x32   :  { %3196 = shalt.err (!%p3193_p9)
}
  0x33   :  { %30 = dma.hbm_to_vmem [thread:$0]  %s3877_s1, 64, %s28_s30, [#allocation9]  }
  0x34   :  { %s3276_s12 = smov [#allocation13]   ;;  %s3277_s15 = smov [#allocation16]  }
  0x35   :  { %s53_s13 = sshll.u32 %s3276_s12, 4  ;;  %s75_s16 = sshll.u32 %s3277_s15, 4  ;;  %s54_s13 = int_to_ptr.vmem [resolvable:$true] %s53_s13  ;;  %s76_s16 = int_to_ptr.vmem [resolvable:$true] %s75_s16 }
  0x36   :  { %s3197_s2 = scalar_lea.hbm %s3881_s5, 16 }
  0x37   :  { %p3198_p10 = scmp.ne.s32.totalorder %s3881_s5, %s3197_s2  ;;  %p3201_p11 = scmp.lt.u32.totalorder %s3197_s2, %s3881_s5 }
  0x39   :  { %p3203_p12 = pnand %p3201_p11, %p3198_p10 }
  0x3b   :  { %3206 = shalt.err (!%p3203_p12)
}
  0x3c   :  { %s3207_s1 = scalar_lea.vmem %s54_s13, 16  ;;  %s3211_s30 = scalar_lea.vmem %s54_s13, 32 }
  0x3d   :  { %p3208_p13 = scmp.ne.s32.totalorder %s54_s13, %s3207_s1  ;;  %p3212_p0 = scmp.lt.s32.totalorder %s54_s13, %s54_s13 }
  0x3e   :  { %p3213_p1 = scmp.lt.s32.totalorder %s3211_s30, %s3207_s1 }
  0x40   :  { %p3214_p2 = por %p3213_p1, %p3212_p0 }
  0x42   :  { %p3215_p3 = pnand %p3214_p2, %p3208_p13 }
  0x44   :  { %3218 = shalt.err (!%p3215_p3)
}
  0x45   :  { %56 = dma.hbm_to_vmem [thread:$0]  %s3881_s5, 16, %s54_s13, [#allocation12]  }
  0x46   :  { %s3219_s29 = scalar_lea.hbm %s3883_s7, 16 }
  0x47   :  { %p3220_p4 = scmp.ne.s32.totalorder %s3883_s7, %s3219_s29  ;;  %p3223_p5 = scmp.lt.u32.totalorder %s3219_s29, %s3883_s7 }
  0x49   :  { %p3225_p6 = pnand %p3223_p5, %p3220_p4 }
  0x4b   :  { %3228 = shalt.err (!%p3225_p6)
}
  0x4c   :  { %s3229_s15 = scalar_lea.vmem %s76_s16, 16  ;;  %s3233_s17 = scalar_lea.vmem %s76_s16, 32 }
  0x4d   :  { %p3230_p7 = scmp.ne.s32.totalorder %s76_s16, %s3229_s15  ;;  %p3234_p8 = scmp.lt.s32.totalorder %s76_s16, %s76_s16 }
  0x4e   :  { %p3235_p9 = scmp.lt.s32.totalorder %s3233_s17, %s3229_s15 }
  0x50   :  { %p3236_p10 = por %p3235_p9, %p3234_p8 }
  0x52   :  { %p3237_p11 = pnand %p3236_p10, %p3230_p7 }
  0x54   :  { %3240 = shalt.err (!%p3237_p11)
}
  0x55   :  { %78 = dma.hbm_to_vmem [thread:$0]  %s3883_s7, 16, %s76_s16, [#allocation15]  }
  0x56   :  { %3263 = dma.done.wait [#allocation9], 64  }
  0x57   :  { %3264 = vsyncadd [#allocation9], 4294967232 }
  0x58   :  { %3265 = dma.done.wait [#allocation12], 528  }
  0x59   :  { %3266 = vsyncadd [#allocation12], 4294966768 }
  0x5a   :  { %3267 = dma.done.wait [#allocation15], 528  }
  0x5b   :  { %3268 = vsyncadd [#allocation15], 4294966768  ;;  %v3278_v0 = vmov 0.0|0.0   ;;  %vm102_vm0 = vcmask 261120   ;;  %vm3279_vm1 = vmmov 0   ;;  %v3280_v1 = vmov 0.0  }
  0x5c   :  { %2813 = vmatprep.subr.bf16.mxu1 %v3278_v0  ;;  %2541 = vmatprep.mubr.msk.f32.mxu1 %vm3279_vm1, %v3280_v1  ;;  %103 = vst.msk [vmem:[#allocation2] sm:$0xff] %vm102_vm0, %v3280_v1  ;;  %104 = vst.msk [vmem:[#allocation3] sm:$0xff] %vm102_vm0, %v3280_v1  ;;  %vm148_vm2 = vcmask 1042432   ;;  %vm123_vm3 = vcmask 23552   ;;  %v272_v2 = vld [vmem:[#allocation11] sm:$0xff]  ;;  %v273_v3 = vld [vmem:[#allocation11 + $0x8] sm:$0xff] }
  0x5d   :  { %105 = vst.msk [vmem:[#allocation4] sm:$0xff] %vm102_vm0, %v3280_v1  ;;  %106 = vst.msk [vmem:[#allocation5] sm:$0xff] %vm102_vm0, %v3280_v1  ;;  %v115_v4 = vld [vmem:[#allocation8] sm:$0x7]  ;;  %v3417_v5 = vpack.c.bf16 %v273_v3, %v272_v2  ;;  %v108_v7 = vld [vmem:[%s3876_s0 + $0x8] sm:$0xff]  ;;  %s3281_s20 = smov 64  }
  0x5e   :  { %2519 = vmatprep.subr.msk.mxu0 %vm148_vm2, %v115_v4  ;;  %v107_v6 = vld [vmem:[%s3876_s0] sm:$0xff]  ;;  %v274_v8 = vld [vmem:[#allocation11 + $0x10] sm:$0xff]  ;;  %s3282_s21 = smov 32   ;;  %v277_v32 = vld [vmem:[%s3880_s4 + $0x8] sm:$0xff]  ;;  %vm401_vm4 = vcmask 523264   ;;  %s3284_s15 = smov [#allocation17]  }
  0x5f   :  { %2520 = vmatpush3.msk.msra.mxu0 %vm148_vm2, %v115_v4  ;;  %2521 = vmatprep.mubr.msk.f32.mxu0 %vm123_vm3, %v107_v6  ;;  %v275_v9 = vld [vmem:[#allocation11 + $0x18] sm:$0xff]  ;;  %v109_v33 = vld [vmem:[%s3876_s0 + $0x10] sm:$0xff]  ;;  %v112_v40 = vld [vmem:[%s3876_s0 + $0x28] sm:$0xff] }
  0x60   :  { %2815 = vmatpush3.bf16.msra.mxu1 %v3417_v5  ;;  %2522 = vmatmul.mubr.msk.f32.vlgmr.msra.gmra.mrb[0].mxu0 %vm123_vm3, %v108_v7  ;;  %v3428_v10 = vpack.c.bf16 %v275_v9, %v274_v8  ;;  %v3442_v13 = vld [vmem:[%s3879_s3] ss:$0 sm:$0xff]  ;;  %v110_v35 = vld [vmem:[%s3876_s0 + $0x18] sm:$0xff]  ;;  %v278_v36 = vld [vmem:[%s3880_s4 + $0x10] sm:$0xff] }
  0x61   :  { %2816 = vmatprep.subr.bf16.mxu1 %v3278_v0  ;;  %2819 = vmatprep.subr.bf16.mxu0 %v3278_v0  ;;  %v276_v31 = vld [vmem:[%s3880_s4] sm:$0xff]  ;;  %v279_v37 = vld [vmem:[%s3880_s4 + $0x18] sm:$0xff]  ;;  %v281_v42 = vld [vmem:[%s3880_s4 + $0x28] sm:$0xff] }
  0x62   :  { %v3460_v34 = vpack.c.bf16 %v277_v32, %v276_v31  ;;  %2524 = vmatprep.mubr.msk.f32.mxu0 %vm123_vm3, %v109_v33  ;;  %v111_v38 = vld [vmem:[%s3876_s0 + $0x20] sm:$0xff]  ;;  %v3477_v39 = vpack.c.bf16 %v279_v37, %v278_v36  ;;  %v113_v43 = vld [vmem:[%s3876_s0 + $0x30] sm:$0xff]  ;;  %v114_v45 = vld [vmem:[%s3876_s0 + $0x38] sm:$0xff]  ;;  %s3283_s0 = smov 96  }
  0x63   :  { %v284_v11 = vld [vmem:[#allocation2] sm:$0xff]  ;;  %v285_v20 = vld [vmem:[#allocation3] sm:$0xff]  ;;  %v282_v46 = vld [vmem:[%s3880_s4 + $0x30] sm:$0xff] }
  0x64   :  { %2818 = vmatpush3.bf16.msra.mxu1 %v3428_v10  ;;  %2525 = vmatmul.mubr.msk.f32.gmra.mrb[2].mxu0 %vm123_vm3, %v110_v35  ;;  %v280_v41 = vld [vmem:[%s3880_s4 + $0x20] sm:$0xff]  ;;  %v283_v47 = vld [vmem:[%s3880_s4 + $0x38] sm:$0xff]  ;;  %v286_v50 = vld [vmem:[#allocation4] sm:$0xff] }
  0x65   :  { %2837 = vmatprep.subr.bf16.mxu1 %v3278_v0  ;;  %2821 = vmatpush3.bf16.msra.mxu0 %v3460_v34  ;;  %v3497_v44 = vpack.c.bf16 %v281_v42, %v280_v41  ;;  %v3515_v49 = vpack.c.bf16 %v283_v47, %v282_v46  ;;  %v3555_v62 = vld [vmem:[#allocation13] ss:$0 sm:$0xff] }
  0x66   :  { %2527 = vmatprep.mubr.msk.f32.mxu0 %vm123_vm3, %v111_v38  ;;  %2822 = vmatprep.subr.bf16.mxu0 %v3278_v0 }
  0x67   :  { %2542 = vmatmul.mubr.msk.f32.vlgmr.msra.gmra.mrb[0].mxu1 %vm102_vm0, %v284_v11  ;;  %v287_v11 = vld [vmem:[#allocation5] sm:$0xff] }
  0x68   :  { %2590 = vmatprep.mubr.msk.f32.mxu1 %vm3279_vm1, %v3280_v1  ;;  %2839 = vmatpush3.bf16.msra.mxu1 %v3460_v34 }
  0x69   :  { %2840 = vmatprep.subr.bf16.mxu1 %v3278_v0  ;;  %2528 = vmatmul.mubr.msk.f32.gmra.mrb[4].mxu0 %vm123_vm3, %v112_v40 }
  0x6a   :  { %2824 = vmatpush3.bf16.msra.mxu0 %v3477_v39  ;;  %2530 = vmatprep.mubr.msk.f32.mxu0 %vm123_vm3, %v113_v43 }
  0x6b   :  { %2825 = vmatprep.subr.bf16.mxu0 %v3278_v0 }
  0x6c   :  { %2842 = vmatpush3.bf16.msra.mxu1 %v3477_v39 }
  0x6d   :  { %2843 = vmatprep.subr.bf16.mxu1 %v3278_v0  ;;  %2531 = vmatmul.mubr.msk.f32.gmra.mrb[6].mxu0 %vm123_vm3, %v114_v45 }
  0x6e   :  { %2827 = vmatpush3.bf16.msra.mxu0 %v3497_v44  ;;  %2560 = vmatprep.mubr.msk.f32.mxu0 %vm3279_vm1, %v3280_v1 }
  0x6f   :  { %2828 = vmatprep.subr.bf16.mxu0 %v3278_v0 }
  0x70   :  { %2845 = vmatpush3.bf16.msra.mxu1 %v3497_v44 }
  0x71   :  { %2846 = vmatprep.subr.bf16.mxu1 %v3278_v0 }
  0x72   :  { %2830 = vmatpush3.bf16.msra.mxu0 %v3515_v49 }
  0x73   :  { %2831 = vmatprep.subr.bf16.mxu0 %v3278_v0 }
  0x74   :  { %2848 = vmatpush3.bf16.msra.mxu1 %v3515_v49 }
  0x75   :  { %2867 = vmatprep.subr.bf16.mxu1 %v3278_v0 }
 0x133   :  { %v3437_v12 = vpop.f32.mrb[0].mxu0 }
 0x134   :  { %v218_v14 = vpop.f32.mrb[1].mxu0  ;;  %v224_v4 = vadd.f32 %v3437_v12, %v3442_v13 }
 0x135   :  { %v219_v15 = vadd.f32 %v3442_v13, %v218_v14 }
 0x137   :  { %v3528_v53 = vpop.f32.mrb[2].mxu0 }
 0x138   :  { %v3530_v54 = vpop.f32.mrb[3].mxu0 }
 0x139   :  { %v229_v45 = vadd.f32 %v3442_v13, %v3530_v54 }
 0x13a   :  { %v359_v16 = vpop.f32.mrb[0].mxu1 }
 0x13b   :  { %v363_v17 = vadd.f32 %v359_v16, %v219_v15  ;;  %v2543_v18 = vpop.f32.mrb[1].mxu1 }
 0x13c   :  { %v3532_v55 = vpop.f32.mrb[4].mxu0 }
 0x13d   :  { %2987 = vtanh.f32 %v363_v17  ;;  %v2325_v21 = vmul.f32 -1.442695, %v363_v17  ;;  %v3534_v56 = vpop.f32.mrb[5].mxu0 }
 0x13f   :  { %2989 = vpow2.f32 %v2325_v21 }
 0x140   :  { %v3536_v57 = vpop.f32.mrb[6].mxu0 }
 0x141   :  { %v3538_v58 = vpop.f32.mrb[7].mxu0 }
 0x147   :  { %v2988_v19 = vpop.eup %2987 }
 0x148   :  { %377 = vrot.lane.b32.xlu0 %v2988_v19, %s3281_s20 }
 0x149   :  { %v2990_v22 = vpop.eup %2989 }
 0x14a   :  { %v367_v23 = vadd.f32 1.0, %v2990_v22 }
 0x14c   :  { %372 = vrot.lane.b32.xlu0 %v285_v20, %s3282_s21  ;;  %2991 = vrcp.f32 %v367_v23 }
 0x156   :  { %v2992_v24 = vpop.eup %2991 }
 0x1ba   :  { %v378_v25 = vpop.permute.xlu0 %377 }
 0x1bb   :  { %v380_v26 = vmul.f32 %v2992_v24, %v378_v25 }
 0x1bd   :  { %382 = vrot.lane.b32.xlu1 %v380_v26, %s3282_s21 }
 0x1be   :  { %v373_v27 = vpop.permute.xlu0 %372 }
 0x1bf   :  { %v375_v28 = vmul.f32 %v2992_v24, %v373_v27 }
 0x22f   :  { %v383_v29 = vpop.permute.xlu1 %382 }
 0x230   :  { %v3448_v30 = vadd.f32 %v383_v29, %v375_v28 }
 0x232   :  { %2993 = vtanh.f32 %v3448_v30 }
 0x23c   :  { %v2994_v48 = vpop.eup %2993 }
 0x23d   :  { %388 = vrot.lane.b32.xlu1 %v2994_v48, %s3281_s20 }
 0x241   :  { %397 = vrot.lane.b32.xlu1 %v286_v50, %s3282_s21 }
 0x2af   :  { %v389_v51 = vpop.permute.xlu1 %388 }
 0x2b0   :  { %v391_v52 = vmul.f32 %v2992_v24, %v389_v51 }
 0x2b2   :  { %393 = vrot.lane.b32.xlu0 %v391_v52, %s3282_s21 }
 0x2b3   :  { %v398_v59 = vpop.permute.xlu1 %397 }
 0x324   :  { %v394_v60 = vpop.permute.xlu0 %393 }
 0x325   :  { %v400_v61 = vsel %vm102_vm0, %v394_v60, %v398_v59 }
 0x326   :  { %2561 = vmatmul.mubr.msk.f32.vlgmr.msra.gmra.mrb[8].mxu0 %vm401_vm4, %v400_v61 }
 0x327   :  { %2833 = vmatpush3.bf16.msra.mxu0 %v3417_v5  ;;  %2571 = vmatprep.mubr.msk.f32.mxu0 %vm3279_vm1, %v3280_v1 }
 0x328   :  { %2834 = vmatprep.subr.bf16.mxu0 %v3278_v0 }
 0x32b   :  { %2836 = vmatpush3.bf16.msra.mxu0 %v3428_v10 }
 0x32c   :  { %2849 = vmatprep.subr.bf16.mxu0 %v3278_v0 }
 0x32e   :  { %2572 = vmatmul.mubr.msk.f32.vlgmr.msra.gmra.mrb[10].mxu0 %vm102_vm0, %v394_v60 }
 0x32f   :  { %2851 = vmatpush3.bf16.msra.mxu0 %v3417_v5  ;;  %2601 = vmatprep.mubr.msk.f32.mxu0 %vm3279_vm1, %v3280_v1 }
 0x330   :  { %2852 = vmatprep.subr.bf16.mxu0 %v3278_v0 }
 0x333   :  { %2854 = vmatpush3.bf16.msra.mxu0 %v3428_v10 }
 0x334   :  { %2855 = vmatprep.subr.bf16.mxu0 %v3278_v0 }
 0x3f9   :  { %v471_v63 = vpop.f32.mrb[8].mxu0 }
 0x3fa   :  { %v472_v2 = vadd.f32 %v3555_v62, %v471_v63  ;;  %v2562_v3 = vpop.f32.mrb[9].mxu0 }
 0x3fc   :  { %2995 = vtanh.f32 %v472_v2  ;;  %v2327_v15 = vmul.f32 -1.442695, %v472_v2 }
 0x401   :  { %v578_v6 = vpop.f32.mrb[10].mxu0 }
 0x402   :  { %v582_v7 = vadd.f32 %v578_v6, %v224_v4  ;;  %v2573_v8 = vpop.f32.mrb[11].mxu0 }
 0x404   :  { %2997 = vtanh.f32 %v582_v7  ;;  %v2329_v16 = vmul.f32 -1.442695, %v582_v7 }
 0x405   :  { %2999 = vpow2.f32 %v2327_v15 }
 0x406   :  { %v2996_v9 = vpop.eup %2995  ;;  %3001 = vpow2.f32 %v2329_v16 }
 0x407   :  { %488 = vrot.lane.b32.xlu0 %v2996_v9, %s3281_s20 }
 0x40b   :  { %483 = vrot.lane.b32.xlu0 %v287_v11, %s3282_s21 }
 0x40e   :  { %v2998_v14 = vpop.eup %2997 }
 0x40f   :  { %592 = vrot.lane.b32.xlu1 %v2998_v14, %s3281_s20  ;;  %v3000_v17 = vpop.eup %2999 }
 0x410   :  { %v478_v18 = vadd.f32 1.0, %v3000_v17  ;;  %v3002_v12 = vpop.eup %3001 }
 0x411   :  { %v586_v19 = vadd.f32 1.0, %v3002_v12 }
 0x412   :  { %3003 = vrcp.f32 %v478_v18 }
 0x413   :  { %3005 = vrcp.f32 %v586_v19 }
 0x41c   :  { %v3004_v20 = vpop.eup %3003 }
 0x41d   :  { %v3006_v23 = vpop.eup %3005 }
 0x41e   :  { %v590_v31 = vmul.f32 %v3006_v23, %v3448_v30 }
 0x479   :  { %v489_v21 = vpop.permute.xlu0 %488 }
 0x47a   :  { %v491_v22 = vmul.f32 %v3004_v20, %v489_v21 }
 0x47c   :  { %493 = vrot.lane.b32.xlu1 %v491_v22, %s3282_s21 }
 0x47d   :  { %v484_v26 = vpop.permute.xlu0 %483 }
 0x47e   :  { %v486_v27 = vmul.f32 %v3004_v20, %v484_v26 }
 0x481   :  { %v593_v24 = vpop.permute.xlu1 %592 }
 0x482   :  { %v595_v25 = vmul.f32 %v3006_v23, %v593_v24 }
 0x484   :  { %597 = vrot.lane.b32.xlu0 %v595_v25, %s3282_s21 }
 0x4ee   :  { %v494_v28 = vpop.permute.xlu1 %493 }
 0x4ef   :  { %v3565_v29 = vadd.f32 %v494_v28, %v486_v27 }
 0x4f1   :  { %3007 = vtanh.f32 %v3565_v29 }
 0x4f6   :  { %v598_v32 = vpop.permute.xlu0 %597 }
 0x4f7   :  { %v600_v33 = vadd.f32 %v598_v32, %v590_v31 }
 0x4f9   :  { %3009 = vtanh.f32 %v600_v33 }
 0x4fb   :  { %v3008_v35 = vpop.eup %3007 }
 0x4fc   :  { %499 = vrot.lane.b32.xlu1 %v3008_v35, %s3281_s20 }
 0x503   :  { %v3010_v36 = vpop.eup %3009 }
 0x504   :  { %603 = vrot.lane.b32.xlu0 %v3010_v36, %s3281_s20 }
 0x56e   :  { %v500_v37 = vpop.permute.xlu1 %499 }
 0x56f   :  { %v3571_v38 = vmul.f32 %v3004_v20, %v500_v37 }
 0x571   :  { %611 = vrot.lane.b32.xlu0 %v3571_v38, %s3281_s20 }
 0x576   :  { %v604_v40 = vpop.permute.xlu0 %603 }
 0x577   :  { %v606_v41 = vmul.f32 %v3006_v23, %v604_v40 }
 0x579   :  { %608 = vrot.lane.b32.xlu1 %v606_v41, %s3282_s21 }
 0x5e3   :  { %v612_v30 = vpop.permute.xlu0 %611 }
 0x5eb   :  { %v609_v42 = vpop.permute.xlu1 %608 }
 0x5ec   :  { %v614_v43 = vsel %vm102_vm0, %v609_v42, %v612_v30  ;;  %2602 = vmatmul.mubr.msk.f32.vlgmr.msra.gmra.mrb[12].mxu0 %vm102_vm0, %v609_v42 }
 0x5ed   :  { %2591 = vmatmul.mubr.msk.f32.vlgmr.msra.gmra.mrb[2].mxu1 %vm401_vm4, %v614_v43  ;;  %2857 = vmatpush3.bf16.msra.mxu0 %v3460_v34 }
 0x5ee   :  { %2858 = vmatprep.subr.bf16.mxu0 %v3278_v0  ;;  %2869 = vmatpush3.bf16.msra.mxu1 %v3417_v5 }
 0x5ef   :  { %2870 = vmatprep.subr.bf16.mxu1 %v3278_v0  ;;  %2631 = vmatprep.mubr.msk.f32.mxu1 %vm3279_vm1, %v3280_v1 }
 0x5f0   :  { %2620 = vmatprep.mubr.msk.f32.mxu0 %vm3279_vm1, %v3280_v1 }
 0x5f1   :  { %2860 = vmatpush3.bf16.msra.mxu0 %v3477_v39 }
 0x5f2   :  { %2861 = vmatprep.subr.bf16.mxu0 %v3278_v0  ;;  %2872 = vmatpush3.bf16.msra.mxu1 %v3428_v10 }
 0x5f3   :  { %2873 = vmatprep.subr.bf16.mxu1 %v3278_v0 }
 0x5f5   :  { %2863 = vmatpush3.bf16.msra.mxu0 %v3497_v44 }
 0x5f6   :  { %2864 = vmatprep.subr.bf16.mxu0 %v3278_v0 }
 0x5f9   :  { %2866 = vmatpush3.bf16.msra.mxu0 %v3515_v49 }
 0x5fa   :  { %2885 = vmatprep.subr.bf16.mxu0 %v3278_v0 }
 0x6bf   :  { %v788_v46 = vpop.f32.mrb[12].mxu0 }
 0x6c0   :  { %v792_v47 = vadd.f32 %v788_v46, %v229_v45  ;;  %v684_v48 = vpop.f32.mrb[2].mxu1  ;;  %v2603_v50 = vpop.f32.mrb[13].mxu0 }
 0x6c1   :  { %v685_v51 = vadd.f32 %v3555_v62, %v684_v48  ;;  %v2592_v52 = vpop.f32.mrb[3].mxu1 }
 0x6c2   :  { %3011 = vtanh.f32 %v792_v47  ;;  %v2333_v61 = vmul.f32 -1.442695, %v792_v47 }
 0x6c3   :  { %3013 = vtanh.f32 %v685_v51  ;;  %v2331_v63 = vmul.f32 -1.442695, %v685_v51 }
 0x6c4   :  { %3015 = vpow2.f32 %v2333_v61 }
 0x6c5   :  { %3017 = vpow2.f32 %v2331_v63 }
 0x6cc   :  { %v3012_v59 = vpop.eup %3011 }
 0x6cd   :  { %v3014_v60 = vpop.eup %3013  ;;  %802 = vrot.lane.b32.xlu0 %v3012_v59, %s3281_s20 }
 0x6ce   :  { %697 = vrot.lane.b32.xlu1 %v3014_v60, %s3281_s20  ;;  %v3016_v54 = vpop.eup %3015 }
 0x6cf   :  { %v3018_v2 = vpop.eup %3017  ;;  %v796_v3 = vadd.f32 1.0, %v3016_v54 }
 0x6d0   :  { %v691_v4 = vadd.f32 1.0, %v3018_v2 }
 0x6d1   :  { %3019 = vrcp.f32 %v796_v3 }
 0x6d2   :  { %3021 = vrcp.f32 %v691_v4 }
 0x6db   :  { %v3020_v6 = vpop.eup %3019 }
 0x6dc   :  { %v3022_v8 = vpop.eup %3021  ;;  %v800_v15 = vmul.f32 %v3020_v6, %v600_v33 }
 0x6dd   :  { %v695_v17 = vmul.f32 %v3022_v8, %v3565_v29  ;;  %v234_v29 = vadd.f32 %v3528_v53, %v3442_v13 }
 0x73f   :  { %v803_v7 = vpop.permute.xlu0 %802 }
 0x740   :  { %v805_v9 = vmul.f32 %v3020_v6, %v803_v7  ;;  %v698_v11 = vpop.permute.xlu1 %697 }
 0x741   :  { %v700_v14 = vmul.f32 %v3022_v8, %v698_v11 }
 0x742   :  { %807 = vrot.lane.b32.xlu0 %v805_v9, %s3282_s21 }
 0x743   :  { %702 = vrot.lane.b32.xlu1 %v700_v14, %s3282_s21 }
 0x7b4   :  { %v808_v16 = vpop.permute.xlu0 %807 }
 0x7b5   :  { %v3603_v18 = vadd.f32 %v808_v16, %v800_v15  ;;  %v703_v12 = vpop.permute.xlu1 %702 }
 0x7b6   :  { %v3605_v19 = vadd.f32 %v703_v12, %v695_v17  ;;  %v239_v17 = vadd.f32 %v3442_v13, %v3534_v56 }
 0x7b7   :  { %3023 = vtanh.f32 %v3603_v18 }
 0x7b8   :  { %3025 = vtanh.f32 %v3605_v19 }
 0x7c1   :  { %v3024_v20 = vpop.eup %3023 }
 0x7c2   :  { %v3026_v21 = vpop.eup %3025  ;;  %813 = vrot.lane.b32.xlu0 %v3024_v20, %s3281_s20 }
 0x7c3   :  { %708 = vrot.lane.b32.xlu1 %v3026_v21, %s3281_s20 }
 0x834   :  { %v814_v22 = vpop.permute.xlu0 %813 }
 0x835   :  { %v816_v23 = vmul.f32 %v3020_v6, %v814_v22  ;;  %v709_v24 = vpop.permute.xlu1 %708 }
 0x836   :  { %v3611_v25 = vmul.f32 %v3022_v8, %v709_v24 }
 0x837   :  { %818 = vrot.lane.b32.xlu1 %v816_v23, %s3282_s21 }
 0x838   :  { %821 = vrot.lane.b32.xlu0 %v3611_v25, %s3281_s20 }
 0x8a9   :  { %v819_v26 = vpop.permute.xlu1 %818 }
 0x8aa   :  { %v822_v27 = vpop.permute.xlu0 %821  ;;  %2632 = vmatmul.mubr.msk.f32.vlgmr.msra.gmra.mrb[4].mxu1 %vm102_vm0, %v819_v26 }
 0x8ab   :  { %v824_v28 = vsel %vm102_vm0, %v819_v26, %v822_v27  ;;  %2875 = vmatpush3.bf16.msra.mxu1 %v3460_v34  ;;  %2650 = vmatprep.mubr.msk.f32.mxu1 %vm3279_vm1, %v3280_v1 }
 0x8ac   :  { %2621 = vmatmul.mubr.msk.f32.vlgmr.msra.gmra.mrb[14].mxu0 %vm401_vm4, %v824_v28  ;;  %2876 = vmatprep.subr.bf16.mxu1 %v3278_v0 }
 0x8ad   :  { %2887 = vmatpush3.bf16.msra.mxu0 %v3417_v5  ;;  %2661 = vmatprep.mubr.msk.f32.mxu0 %vm3279_vm1, %v3280_v1 }
 0x8ae   :  { %2888 = vmatprep.subr.bf16.mxu0 %v3278_v0 }
 0x8af   :  { %2878 = vmatpush3.bf16.msra.mxu1 %v3477_v39 }
 0x8b0   :  { %2879 = vmatprep.subr.bf16.mxu1 %v3278_v0 }
 0x8b1   :  { %2890 = vmatpush3.bf16.msra.mxu0 %v3428_v10 }
 0x8b2   :  { %2891 = vmatprep.subr.bf16.mxu0 %v3278_v0 }
 0x8b3   :  { %2881 = vmatpush3.bf16.msra.mxu1 %v3497_v44 }
 0x8b4   :  { %2882 = vmatprep.subr.bf16.mxu1 %v3278_v0 }
 0x8b7   :  { %2884 = vmatpush3.bf16.msra.mxu1 %v3515_v49 }
 0x8b8   :  { %2903 = vmatprep.subr.bf16.mxu1 %v3278_v0 }
 0x97d   :  { %v998_v31 = vpop.f32.mrb[4].mxu1 }
 0x97e   :  { %v1002_v32 = vadd.f32 %v998_v31, %v234_v29  ;;  %v2633_v33 = vpop.f32.mrb[5].mxu1 }
 0x97f   :  { %v894_v35 = vpop.f32.mrb[14].mxu0 }
 0x980   :  { %3027 = vtanh.f32 %v1002_v32  ;;  %v895_v36 = vadd.f32 %v3555_v62, %v894_v35  ;;  %v2622_v37 = vpop.f32.mrb[15].mxu0  ;;  %v2337_v30 = vmul.f32 -1.442695, %v1002_v32 }
 0x982   :  { %3029 = vtanh.f32 %v895_v36  ;;  %v2335_v42 = vmul.f32 -1.442695, %v895_v36 }
 0x983   :  { %3031 = vpow2.f32 %v2337_v30 }
 0x984   :  { %3033 = vpow2.f32 %v2335_v42 }
 0x98a   :  { %v3028_v40 = vpop.eup %3027 }
 0x98b   :  { %1012 = vrot.lane.b32.xlu0 %v3028_v40, %s3281_s20 }
 0x98c   :  { %v3030_v41 = vpop.eup %3029 }
 0x98d   :  { %907 = vrot.lane.b32.xlu1 %v3030_v41, %s3281_s20  ;;  %v3032_v53 = vpop.eup %3031 }
 0x98e   :  { %v3034_v43 = vpop.eup %3033  ;;  %v1006_v45 = vadd.f32 1.0, %v3032_v53 }
 0x98f   :  { %v901_v46 = vadd.f32 1.0, %v3034_v43 }
 0x990   :  { %3035 = vrcp.f32 %v1006_v45 }
 0x991   :  { %3037 = vrcp.f32 %v901_v46 }
 0x99a   :  { %v3036_v47 = vpop.eup %3035 }
 0x99b   :  { %v3038_v51 = vpop.eup %3037  ;;  %v1010_v60 = vmul.f32 %v3036_v47, %v3603_v18 }
 0x99c   :  { %v905_v54 = vmul.f32 %v3038_v51, %v3605_v19 }
 0x9fd   :  { %v1013_v48 = vpop.permute.xlu0 %1012 }
 0x9fe   :  { %v1015_v50 = vmul.f32 %v3036_v47, %v1013_v48 }
 0x9ff   :  { %v908_v52 = vpop.permute.xlu1 %907 }
 0xa00   :  { %1017 = vrot.lane.b32.xlu0 %v1015_v50, %s3282_s21  ;;  %v910_v59 = vmul.f32 %v3038_v51, %v908_v52 }
 0xa02   :  { %912 = vrot.lane.b32.xlu1 %v910_v59, %s3282_s21 }
 0xa72   :  { %v1018_v61 = vpop.permute.xlu0 %1017 }
 0xa73   :  { %v3643_v63 = vadd.f32 %v1018_v61, %v1010_v60 }
 0xa74   :  { %v913_v2 = vpop.permute.xlu1 %912 }
 0xa75   :  { %3039 = vtanh.f32 %v3643_v63  ;;  %v3647_v3 = vadd.f32 %v913_v2, %v905_v54 }
 0xa77   :  { %3041 = vtanh.f32 %v3647_v3 }
 0xa7f   :  { %v3040_v4 = vpop.eup %3039 }
 0xa80   :  { %1023 = vrot.lane.b32.xlu0 %v3040_v4, %s3281_s20 }
 0xa81   :  { %v3042_v6 = vpop.eup %3041 }
 0xa82   :  { %918 = vrot.lane.b32.xlu1 %v3042_v6, %s3281_s20 }
 0xaf2   :  { %v1024_v7 = vpop.permute.xlu0 %1023 }
 0xaf3   :  { %v1026_v8 = vmul.f32 %v3036_v47, %v1024_v7 }
 0xaf4   :  { %v919_v9 = vpop.permute.xlu1 %918 }
 0xaf5   :  { %1028 = vrot.lane.b32.xlu1 %v1026_v8, %s3282_s21  ;;  %v3653_v11 = vmul.f32 %v3038_v51, %v919_v9 }
 0xaf7   :  { %1031 = vrot.lane.b32.xlu0 %v3653_v11, %s3281_s20 }
 0xb67   :  { %v1029_v14 = vpop.permute.xlu1 %1028 }
 0xb68   :  { %2662 = vmatmul.mubr.msk.f32.vlgmr.msra.gmra.mrb[16].mxu0 %vm102_vm0, %v1029_v14 }
 0xb69   :  { %2893 = vmatpush3.bf16.msra.mxu0 %v3460_v34  ;;  %2680 = vmatprep.mubr.msk.f32.mxu0 %vm3279_vm1, %v3280_v1  ;;  %v1032_v15 = vpop.permute.xlu0 %1031 }
 0xb6a   :  { %2894 = vmatprep.subr.bf16.mxu0 %v3278_v0  ;;  %v1034_v16 = vsel %vm102_vm0, %v1029_v14, %v1032_v15 }
 0xb6b   :  { %2651 = vmatmul.mubr.msk.f32.vlgmr.msra.gmra.mrb[6].mxu1 %vm401_vm4, %v1034_v16 }
 0xb6c   :  { %2905 = vmatpush3.bf16.msra.mxu1 %v3417_v5  ;;  %2691 = vmatprep.mubr.msk.f32.mxu1 %vm3279_vm1, %v3280_v1 }
 0xb6d   :  { %2896 = vmatpush3.bf16.msra.mxu0 %v3477_v39  ;;  %2906 = vmatprep.subr.bf16.mxu1 %v3278_v0 }
 0xb6e   :  { %2897 = vmatprep.subr.bf16.mxu0 %v3278_v0 }
 0xb70   :  { %2908 = vmatpush3.bf16.msra.mxu1 %v3428_v10 }
 0xb71   :  { %2899 = vmatpush3.bf16.msra.mxu0 %v3497_v44  ;;  %2909 = vmatprep.subr.bf16.mxu1 %v3278_v0 }
 0xb72   :  { %2900 = vmatprep.subr.bf16.mxu0 %v3278_v0 }
 0xb75   :  { %2902 = vmatpush3.bf16.msra.mxu0 %v3515_v49 }
 0xb76   :  { %2921 = vmatprep.subr.bf16.mxu0 %v3278_v0 }
 0xc3b   :  { %v1208_v18 = vpop.f32.mrb[16].mxu0 }
 0xc3c   :  { %v1212_v12 = vadd.f32 %v1208_v18, %v239_v17  ;;  %v2663_v19 = vpop.f32.mrb[17].mxu0 }
 0xc3e   :  { %3043 = vtanh.f32 %v1212_v12  ;;  %v1104_v20 = vpop.f32.mrb[6].mxu1  ;;  %v2341_v26 = vmul.f32 -1.442695, %v1212_v12 }
 0xc3f   :  { %v1105_v21 = vadd.f32 %v3555_v62, %v1104_v20  ;;  %v2652_v22 = vpop.f32.mrb[7].mxu1 }
 0xc41   :  { %3045 = vtanh.f32 %v1105_v21  ;;  %v2339_v27 = vmul.f32 -1.442695, %v1105_v21 }
 0xc42   :  { %3047 = vpow2.f32 %v2341_v26 }
 0xc43   :  { %3049 = vpow2.f32 %v2339_v27 }
 0xc48   :  { %v3044_v23 = vpop.eup %3043 }
 0xc49   :  { %1222 = vrot.lane.b32.xlu0 %v3044_v23, %s3281_s20 }
 0xc4b   :  { %v3046_v24 = vpop.eup %3045 }
 0xc4c   :  { %1117 = vrot.lane.b32.xlu1 %v3046_v24, %s3281_s20  ;;  %v3048_v56 = vpop.eup %3047 }
 0xc4d   :  { %v1216_v28 = vadd.f32 1.0, %v3048_v56  ;;  %v3050_v29 = vpop.eup %3049 }
 0xc4e   :  { %v1111_v31 = vadd.f32 1.0, %v3050_v29 }
 0xc4f   :  { %3051 = vrcp.f32 %v1216_v28 }
 0xc50   :  { %3053 = vrcp.f32 %v1111_v31 }
 0xc59   :  { %v3052_v32 = vpop.eup %3051 }
 0xc5a   :  { %v3054_v36 = vpop.eup %3053  ;;  %v1220_v41 = vmul.f32 %v3052_v32, %v3643_v63  ;;  %v244_v63 = vadd.f32 %v3532_v55, %v3442_v13 }
 0xc5b   :  { %v1115_v53 = vmul.f32 %v3054_v36, %v3647_v3 }
 0xcbb   :  { %v1223_v33 = vpop.permute.xlu0 %1222 }
 0xcbc   :  { %v1225_v35 = vmul.f32 %v3052_v32, %v1223_v33 }
 0xcbe   :  { %1227 = vrot.lane.b32.xlu0 %v1225_v35, %s3282_s21  ;;  %v1118_v37 = vpop.permute.xlu1 %1117 }
 0xcbf   :  { %v1120_v40 = vmul.f32 %v3054_v36, %v1118_v37 }
 0xcc1   :  { %1122 = vrot.lane.b32.xlu1 %v1120_v40, %s3282_s21 }
 0xd30   :  { %v1228_v30 = vpop.permute.xlu0 %1227 }
 0xd31   :  { %v3684_v42 = vadd.f32 %v1228_v30, %v1220_v41 }
 0xd33   :  { %3055 = vtanh.f32 %v3684_v42  ;;  %v1123_v43 = vpop.permute.xlu1 %1122 }
 0xd34   :  { %v3688_v45 = vadd.f32 %v1123_v43, %v1115_v53 }
 0xd36   :  { %3057 = vtanh.f32 %v3688_v45 }
 0xd3d   :  { %v3056_v46 = vpop.eup %3055 }
 0xd3e   :  { %1233 = vrot.lane.b32.xlu0 %v3056_v46, %s3281_s20 }
 0xd40   :  { %v3058_v47 = vpop.eup %3057 }
 0xd41   :  { %1128 = vrot.lane.b32.xlu1 %v3058_v47, %s3281_s20 }
 0xdb0   :  { %v1234_v48 = vpop.permute.xlu0 %1233 }
 0xdb1   :  { %v1236_v50 = vmul.f32 %v3052_v32, %v1234_v48 }
 0xdb3   :  { %1238 = vrot.lane.b32.xlu1 %v1236_v50, %s3282_s21  ;;  %v1129_v51 = vpop.permute.xlu1 %1128 }
 0xdb4   :  { %v3694_v52 = vmul.f32 %v3054_v36, %v1129_v51 }
 0xdb6   :  { %1241 = vrot.lane.b32.xlu0 %v3694_v52, %s3281_s20 }
 0xe25   :  { %v1239_v59 = vpop.permute.xlu1 %1238 }
 0xe26   :  { %2692 = vmatmul.mubr.msk.f32.vlgmr.msra.gmra.mrb[8].mxu1 %vm102_vm0, %v1239_v59 }
 0xe27   :  { %2911 = vmatpush3.bf16.msra.mxu1 %v3460_v34  ;;  %2710 = vmatprep.mubr.msk.f32.mxu1 %vm3279_vm1, %v3280_v1 }
 0xe28   :  { %2912 = vmatprep.subr.bf16.mxu1 %v3278_v0  ;;  %v1242_v60 = vpop.permute.xlu0 %1241 }
 0xe29   :  { %v1244_v61 = vsel %vm102_vm0, %v1239_v59, %v1242_v60 }
 0xe2a   :  { %2681 = vmatmul.mubr.msk.f32.vlgmr.msra.gmra.mrb[18].mxu0 %vm401_vm4, %v1244_v61 }
 0xe2b   :  { %2914 = vmatpush3.bf16.msra.mxu1 %v3477_v39  ;;  %2923 = vmatpush3.bf16.msra.mxu0 %v3417_v5 }
 0xe2c   :  { %2915 = vmatprep.subr.bf16.mxu1 %v3278_v0  ;;  %2924 = vmatprep.subr.bf16.mxu0 %v3278_v0 }
 0xe2d   :  { %2721 = vmatprep.mubr.msk.f32.mxu0 %vm3279_vm1, %v3280_v1 }
 0xe2f   :  { %2917 = vmatpush3.bf16.msra.mxu1 %v3497_v44  ;;  %2926 = vmatpush3.bf16.msra.mxu0 %v3428_v10 }
 0xe30   :  { %2918 = vmatprep.subr.bf16.mxu1 %v3278_v0  ;;  %2927 = vmatprep.subr.bf16.mxu0 %v3278_v0 }
 0xe33   :  { %2920 = vmatpush3.bf16.msra.mxu1 %v3515_v49 }
 0xe34   :  { %2939 = vmatprep.subr.bf16.mxu1 %v3278_v0 }
 0xef9   :  { %v1418_v54 = vpop.f32.mrb[8].mxu1 }
 0xefa   :  { %v1422_v2 = vadd.f32 %v1418_v54, %v244_v63  ;;  %v2693_v3 = vpop.f32.mrb[9].mxu1 }
 0xefc   :  { %3059 = vtanh.f32 %v1422_v2  ;;  %v2345_v14 = vmul.f32 -1.442695, %v1422_v2 }
 0xefd   :  { %v1314_v4 = vpop.f32.mrb[18].mxu0 }
 0xefe   :  { %v1315_v6 = vadd.f32 %v3555_v62, %v1314_v4  ;;  %v2682_v7 = vpop.f32.mrb[19].mxu0 }
 0xf00   :  { %3061 = vtanh.f32 %v1315_v6  ;;  %v2343_v15 = vmul.f32 -1.442695, %v1315_v6 }
 0xf01   :  { %3063 = vpow2.f32 %v2345_v14 }
 0xf02   :  { %3065 = vpow2.f32 %v2343_v15 }
 0xf06   :  { %v3060_v8 = vpop.eup %3059 }
 0xf07   :  { %1432 = vrot.lane.b32.xlu0 %v3060_v8, %s3281_s20 }
 0xf0a   :  { %v3062_v9 = vpop.eup %3061 }
 0xf0b   :  { %1327 = vrot.lane.b32.xlu1 %v3062_v9, %s3281_s20  ;;  %v3064_v55 = vpop.eup %3063 }
 0xf0c   :  { %v1426_v16 = vadd.f32 1.0, %v3064_v55  ;;  %v3066_v17 = vpop.eup %3065 }
 0xf0d   :  { %v1321_v18 = vadd.f32 1.0, %v3066_v17 }
 0xf0e   :  { %3067 = vrcp.f32 %v1426_v16 }
 0xf0f   :  { %3069 = vrcp.f32 %v1321_v18 }
 0xf18   :  { %v3068_v12 = vpop.eup %3067 }
 0xf19   :  { %v3070_v21 = vpop.eup %3069  ;;  %v1430_v24 = vmul.f32 %v3068_v12, %v3684_v42  ;;  %v249_v42 = vadd.f32 %v3442_v13, %v3538_v58 }
 0xf1a   :  { %v1325_v56 = vmul.f32 %v3070_v21, %v3688_v45 }
 0xf79   :  { %v1433_v19 = vpop.permute.xlu0 %1432 }
 0xf7a   :  { %v1435_v20 = vmul.f32 %v3068_v12, %v1433_v19 }
 0xf7c   :  { %1437 = vrot.lane.b32.xlu0 %v1435_v20, %s3282_s21 }
 0xf7d   :  { %v1328_v22 = vpop.permute.xlu1 %1327 }
 0xf7e   :  { %v1330_v23 = vmul.f32 %v3070_v21, %v1328_v22 }
 0xf80   :  { %1332 = vrot.lane.b32.xlu1 %v1330_v23, %s3282_s21 }
 0xfee   :  { %v1438_v26 = vpop.permute.xlu0 %1437 }
 0xfef   :  { %v3725_v27 = vadd.f32 %v1438_v26, %v1430_v24 }
 0xff1   :  { %3071 = vtanh.f32 %v3725_v27 }
 0xff2   :  { %v1333_v28 = vpop.permute.xlu1 %1332 }
 0xff3   :  { %v3729_v29 = vadd.f32 %v1333_v28, %v1325_v56 }
 0xff5   :  { %3073 = vtanh.f32 %v3729_v29 }
 0xffb   :  { %v3072_v31 = vpop.eup %3071 }
 0xffc   :  { %1443 = vrot.lane.b32.xlu0 %v3072_v31, %s3281_s20 }
 0xfff   :  { %v3074_v32 = vpop.eup %3073 }
0x1000   :  { %1338 = vrot.lane.b32.xlu1 %v3074_v32, %s3281_s20 }
0x106e   :  { %v1444_v33 = vpop.permute.xlu0 %1443 }
0x106f   :  { %v1446_v35 = vmul.f32 %v3068_v12, %v1444_v33 }
0x1071   :  { %1448 = vrot.lane.b32.xlu1 %v1446_v35, %s3282_s21 }
0x1072   :  { %v1339_v36 = vpop.permute.xlu1 %1338 }
0x1073   :  { %v3735_v37 = vmul.f32 %v3070_v21, %v1339_v36 }
0x1075   :  { %1451 = vrot.lane.b32.xlu0 %v3735_v37, %s3281_s20 }
0x10e3   :  { %v1449_v40 = vpop.permute.xlu1 %1448 }
0x10e4   :  { %2722 = vmatmul.mubr.msk.f32.vlgmr.msra.gmra.mrb[20].mxu0 %vm102_vm0, %v1449_v40 }
0x10e5   :  { %2929 = vmatpush3.bf16.msra.mxu0 %v3460_v34  ;;  %2740 = vmatprep.mubr.msk.f32.mxu0 %vm3279_vm1, %v3280_v1 }
0x10e6   :  { %2930 = vmatprep.subr.bf16.mxu0 %v3278_v0 }
0x10e7   :  { %v1452_v41 = vpop.permute.xlu0 %1451 }
0x10e8   :  { %v1454_v30 = vsel %vm102_vm0, %v1449_v40, %v1452_v41 }
0x10e9   :  { %2932 = vmatpush3.bf16.msra.mxu0 %v3477_v39  ;;  %2711 = vmatmul.mubr.msk.f32.vlgmr.msra.gmra.mrb[10].mxu1 %vm401_vm4, %v1454_v30 }
0x10ea   :  { %2933 = vmatprep.subr.bf16.mxu0 %v3278_v0  ;;  %2941 = vmatpush3.bf16.msra.mxu1 %v3417_v5 }
0x10eb   :  { %2751 = vmatprep.mubr.msk.f32.mxu1 %vm3279_vm1, %v3280_v1  ;;  %2942 = vmatprep.subr.bf16.mxu1 %v3278_v0 }
0x10ed   :  { %2935 = vmatpush3.bf16.msra.mxu0 %v3497_v44 }
0x10ee   :  { %2936 = vmatprep.subr.bf16.mxu0 %v3278_v0  ;;  %2944 = vmatpush3.bf16.msra.mxu1 %v3428_v10 }
0x10ef   :  { %2945 = vmatprep.subr.bf16.mxu1 %v3278_v0 }
0x10f1   :  { %2938 = vmatpush3.bf16.msra.mxu0 %v3515_v49 }
0x11b7   :  { %v1628_v53 = vpop.f32.mrb[20].mxu0 }
0x11b8   :  { %v1632_v5 = vadd.f32 %v1628_v53, %v249_v42  ;;  %v2723_v43 = vpop.f32.mrb[21].mxu0 }
0x11ba   :  { %3075 = vtanh.f32 %v1632_v5  ;;  %v2349_v50 = vmul.f32 -1.442695, %v1632_v5 }
0x11bc   :  { %v1524_v45 = vpop.f32.mrb[10].mxu1 }
0x11bd   :  { %v1525_v46 = vadd.f32 %v3555_v62, %v1524_v45  ;;  %v2712_v47 = vpop.f32.mrb[11].mxu1 }
0x11bf   :  { %3077 = vtanh.f32 %v1525_v46  ;;  %v2347_v51 = vmul.f32 -1.442695, %v1525_v46 }
0x11c0   :  { %3079 = vpow2.f32 %v2349_v50 }
0x11c1   :  { %3081 = vpow2.f32 %v2347_v51 }
0x11c4   :  { %v3076_v48 = vpop.eup %3075 }
0x11c5   :  { %1642 = vrot.lane.b32.xlu0 %v3076_v48, %s3281_s20 }
0x11c9   :  { %v3078_v10 = vpop.eup %3077 }
0x11ca   :  { %1537 = vrot.lane.b32.xlu1 %v3078_v10, %s3281_s20  ;;  %v3080_v58 = vpop.eup %3079 }
0x11cb   :  { %v1636_v59 = vadd.f32 1.0, %v3080_v58  ;;  %v3082_v60 = vpop.eup %3081 }
0x11cc   :  { %v1531_v61 = vadd.f32 1.0, %v3082_v60 }
0x11cd   :  { %3083 = vrcp.f32 %v1636_v59 }
0x11ce   :  { %3085 = vrcp.f32 %v1531_v61 }
0x11d7   :  { %v3084_v63 = vpop.eup %3083 }
0x11d8   :  { %v3086_v3 = vpop.eup %3085  ;;  %v1640_v7 = vmul.f32 %v3084_v63, %v3725_v27 }
0x11d9   :  { %v1535_v14 = vmul.f32 %v3086_v3, %v3729_v29 }
0x1237   :  { %v1643_v54 = vpop.permute.xlu0 %1642 }
0x1238   :  { %v1645_v2 = vmul.f32 %v3084_v63, %v1643_v54 }
0x123a   :  { %1647 = vrot.lane.b32.xlu0 %v1645_v2, %s3282_s21 }
0x123c   :  { %v1538_v4 = vpop.permute.xlu1 %1537 }
0x123d   :  { %v1540_v6 = vmul.f32 %v3086_v3, %v1538_v4 }
0x123f   :  { %1542 = vrot.lane.b32.xlu1 %v1540_v6, %s3282_s21 }
0x12ac   :  { %v1648_v8 = vpop.permute.xlu0 %1647 }
0x12ad   :  { %v1650_v9 = vadd.f32 %v1648_v8, %v1640_v7 }
0x12af   :  { %3087 = vtanh.f32 %v1650_v9 }
0x12b1   :  { %v1543_v15 = vpop.permute.xlu1 %1542 }
0x12b2   :  { %v1545_v55 = vadd.f32 %v1543_v15, %v1535_v14 }
0x12b4   :  { %3089 = vtanh.f32 %v1545_v55 }
0x12b9   :  { %v3088_v16 = vpop.eup %3087 }
0x12ba   :  { %1653 = vrot.lane.b32.xlu0 %v3088_v16, %s3281_s20  ;;  %v1999_v16 = vld [vmem:[#allocation14 + $0x8] sm:$0xff] }
0x12be   :  { %v3090_v17 = vpop.eup %3089 }
0x12bf   :  { %1548 = vrot.lane.b32.xlu1 %v3090_v17, %s3281_s20 }
0x132c   :  { %v1654_v18 = vpop.permute.xlu0 %1653 }
0x132d   :  { %v1656_v12 = vmul.f32 %v3084_v63, %v1654_v18 }
0x132f   :  { %1658 = vrot.lane.b32.xlu1 %v1656_v12, %s3282_s21 }
0x1331   :  { %v1549_v19 = vpop.permute.xlu1 %1548 }
0x1332   :  { %v3769_v20 = vmul.f32 %v3086_v3, %v1549_v19 }
0x1334   :  { %1661 = vrot.lane.b32.xlu0 %v3769_v20, %s3281_s20 }
0x13a1   :  { %v1659_v21 = vpop.permute.xlu1 %1658 }
0x13a2   :  { %2752 = vmatmul.mubr.msk.f32.vlgmr.msra.gmra.mrb[12].mxu1 %vm102_vm0, %v1659_v21 }
0x13a3   :  { %2947 = vmatpush3.bf16.msra.mxu1 %v3460_v34  ;;  %2770 = vmatprep.mubr.msk.f32.mxu1 %vm3279_vm1, %v3280_v1  ;;  %v254_v1 = vadd.f32 %v3536_v57, %v3442_v13 }
0x13a4   :  { %2948 = vmatprep.subr.bf16.mxu1 %v3278_v0 }
0x13a6   :  { %v1662_v22 = vpop.permute.xlu0 %1661 }
0x13a7   :  { %2950 = vmatpush3.bf16.msra.mxu1 %v3477_v39  ;;  %v1664_v23 = vsel %vm102_vm0, %v1659_v21, %v1662_v22 }
0x13a8   :  { %2951 = vmatprep.subr.bf16.mxu1 %v3278_v0  ;;  %2741 = vmatmul.mubr.msk.f32.vlgmr.msra.gmra.mrb[22].mxu0 %vm401_vm4, %v1664_v23 }
0x13ab   :  { %2953 = vmatpush3.bf16.msra.mxu1 %v3497_v44 }
0x13ac   :  { %2954 = vmatprep.subr.bf16.mxu1 %v3278_v0 }
0x13af   :  { %2956 = vmatpush3.bf16.msra.mxu1 %v3515_v49 }
0x1475   :  { %v1838_v34 = vpop.f32.mrb[12].mxu1 }
0x1476   :  { %v1842_v24 = vadd.f32 %v1838_v34, %v254_v1  ;;  %v2753_v26 = vpop.f32.mrb[13].mxu1 }
0x1478   :  { %3091 = vtanh.f32 %v1842_v24  ;;  %v2353_v0 = vmul.f32 -1.442695, %v1842_v24 }
0x147b   :  { %v1734_v39 = vpop.f32.mrb[22].mxu0 }
0x147c   :  { %v1735_v27 = vadd.f32 %v3555_v62, %v1734_v39  ;;  %v2742_v56 = vpop.f32.mrb[23].mxu0 }
0x147e   :  { %3093 = vtanh.f32 %v1735_v27  ;;  %v2351_v49 = vmul.f32 -1.442695, %v1735_v27 }
0x147f   :  { %3095 = vpow2.f32 %v2353_v0  ;;  %v2146_v0 = vld [vmem:[%s3884_s8] sm:$0xff] }
0x1480   :  { %3097 = vpow2.f32 %v2351_v49  ;;  %v2147_v49 = vld [vmem:[%s3884_s8 + $0x8] sm:$0xff] }
0x1482   :  { %v3092_v28 = vpop.eup %3091 }
0x1483   :  { %1852 = vrot.lane.b32.xlu0 %v3092_v28, %s3281_s20 }
0x1488   :  { %v3094_v44 = vpop.eup %3093 }
0x1489   :  { %1747 = vrot.lane.b32.xlu1 %v3094_v44, %s3281_s20  ;;  %v3096_v13 = vpop.eup %3095 }
0x148a   :  { %v1846_v57 = vadd.f32 1.0, %v3096_v13  ;;  %v3098_v29 = vpop.eup %3097  ;;  %v2965_v13 = vpack.c.bf16 %v2147_v49, %v2146_v0 }
0x148b   :  { %v1741_v31 = vadd.f32 1.0, %v3098_v29  ;;  %v2149_v29 = vld [vmem:[%s3884_s8 + $0x18] sm:$0xff] }
0x148c   :  { %3099 = vrcp.f32 %v1846_v57  ;;  %2966 = vmatprep.subr.bf16.mxu1 %v2965_v13  ;;  %v2148_v57 = vld [vmem:[%s3884_s8 + $0x10] sm:$0xff] }
0x148d   :  { %3101 = vrcp.f32 %v1741_v31  ;;  %v2969_v31 = vpack.c.bf16 %v2149_v29, %v2148_v57 }
0x1496   :  { %v3100_v32 = vpop.eup %3099 }
0x1497   :  { %v3102_v36 = vpop.eup %3101  ;;  %v1850_v30 = vmul.f32 %v3100_v32, %v1650_v9 }
0x1498   :  { %v1745_v5 = vmul.f32 %v3102_v36, %v1545_v55  ;;  %v1998_v55 = vld [vmem:[#allocation14] sm:$0xff] }
0x1499   :  { %v2957_v17 = vpack.c.bf16 %v1999_v16, %v1998_v55 }
0x149b   :  { %2958 = vmatprep.subr.bf16.mxu0 %v2957_v17 }
0x149c   :  { %2960 = vmatpush3.bf16.msra.mxu0 %v2957_v17 }
0x14f5   :  { %v1853_v33 = vpop.permute.xlu0 %1852 }
0x14f6   :  { %v1855_v35 = vmul.f32 %v3100_v32, %v1853_v33 }
0x14f8   :  { %1857 = vrot.lane.b32.xlu0 %v1855_v35, %s3282_s21 }
0x14fb   :  { %v1748_v40 = vpop.permute.xlu1 %1747 }
0x14fc   :  { %v1750_v41 = vmul.f32 %v3102_v36, %v1748_v40 }
0x14fe   :  { %1752 = vrot.lane.b32.xlu1 %v1750_v41, %s3282_s21 }
0x156a   :  { %v1858_v42 = vpop.permute.xlu0 %1857 }
0x156b   :  { %v1860_v53 = vadd.f32 %v1858_v42, %v1850_v30 }
0x156d   :  { %3103 = vtanh.f32 %v1860_v53 }
0x1570   :  { %v1753_v43 = vpop.permute.xlu1 %1752 }
0x1571   :  { %v1755_v45 = vadd.f32 %v1753_v43, %v1745_v5 }
0x1573   :  { %3105 = vtanh.f32 %v1755_v45 }
0x1577   :  { %v3104_v46 = vpop.eup %3103 }
0x1578   :  { %1863 = vrot.lane.b32.xlu0 %v3104_v46, %s3281_s20 }
0x157d   :  { %v3106_v47 = vpop.eup %3105 }
0x157e   :  { %1758 = vrot.lane.b32.xlu1 %v3106_v47, %s3281_s20 }
0x15ea   :  { %v1864_v48 = vpop.permute.xlu0 %1863 }
0x15eb   :  { %v1866_v10 = vmul.f32 %v3100_v32, %v1864_v48 }
0x15ed   :  { %1868 = vrot.lane.b32.xlu1 %v1866_v10, %s3282_s21 }
0x15f0   :  { %v1759_v50 = vpop.permute.xlu1 %1758 }
0x15f1   :  { %v1761_v51 = vmul.f32 %v3102_v36, %v1759_v50  ;;  %v2356_v36 = vld [vmem:[#allocation16] ss:$0 sm:$0xff] }
0x15f3   :  { %1871 = vrot.lane.b32.xlu0 %v1761_v51, %s3281_s20 }
0x165f   :  { %v1869_v58 = vpop.permute.xlu1 %1868 }
0x1660   :  { %1978 = vst.msk [vmem:[#allocation2] sm:$0xff] %vm102_vm0, %v1869_v58 }
0x1665   :  { %v1872_v59 = vpop.permute.xlu0 %1871 }
0x1666   :  { %v1874_v60 = vsel %vm102_vm0, %v1869_v58, %v1872_v59 }
0x1667   :  { %2771 = vmatmul.mubr.msk.f32.vlgmr.msra.gmra.mrb[14].mxu1 %vm401_vm4, %v1874_v60 }
0x1668   :  { %2968 = vmatpush3.bf16.msra.mxu1 %v2965_v13 }
0x1669   :  { %2970 = vmatprep.subr.bf16.mxu1 %v2969_v31 }
0x166c   :  { %2972 = vmatpush3.bf16.msra.mxu1 %v2969_v31 }
0x173a   :  { %v1944_v61 = vpop.f32.mrb[14].mxu1 }
0x173b   :  { %v1945_v63 = vadd.f32 %v3555_v62, %v1944_v61  ;;  %v2772_v54 = vpop.f32.mrb[15].mxu1 }
0x173d   :  { %3107 = vtanh.f32 %v1945_v63  ;;  %v2355_v3 = vmul.f32 -1.442695, %v1945_v63 }
0x173f   :  { %3109 = vpow2.f32 %v2355_v3 }
0x1747   :  { %v3108_v2 = vpop.eup %3107 }
0x1748   :  { %1957 = vrot.lane.b32.xlu1 %v3108_v2, %s3281_s20 }
0x1749   :  { %v3110_v4 = vpop.eup %3109 }
0x174a   :  { %v1951_v6 = vadd.f32 1.0, %v3110_v4 }
0x174c   :  { %3111 = vrcp.f32 %v1951_v6 }
0x1756   :  { %v3112_v7 = vpop.eup %3111 }
0x1757   :  { %v1955_v62 = vmul.f32 %v3112_v7, %v1755_v45 }
0x17ba   :  { %v1958_v8 = vpop.permute.xlu1 %1957 }
0x17bb   :  { %v1960_v9 = vmul.f32 %v3112_v7, %v1958_v8 }
0x17bd   :  { %1962 = vrot.lane.b32.xlu0 %v1960_v9, %s3282_s21 }
0x17c1   :  { %504 = vrot.lane.b32.xlu0 %v3571_v38, %s3282_s21  ;;  %v2000_v38 = vld [vmem:[#allocation14 + $0x10] sm:$0xff] }
0x17c5   :  { %923 = vrot.lane.b32.xlu0 %v3653_v11, %s3282_s21  ;;  %v2001_v11 = vld [vmem:[#allocation14 + $0x18] sm:$0xff] }
0x17c9   :  { %1343 = vrot.lane.b32.xlu0 %v3735_v37, %s3282_s21  ;;  %v2961_v37 = vpack.c.bf16 %v2001_v11, %v2000_v38 }
0x17cb   :  { %2962 = vmatprep.subr.bf16.mxu0 %v2961_v37 }
0x17cc   :  { %2964 = vmatpush3.bf16.msra.mxu0 %v2961_v37 }
0x17cd   :  { %1763 = vrot.lane.b32.xlu0 %v1761_v51, %s3282_s21 }
0x17d1   :  { %1980 = vrot.lane.b32.xlu0 %v1860_v53, %s3283_s0 }
0x182f   :  { %v1963_v14 = vpop.permute.xlu0 %1962 }
0x1830   :  { %v1965_v15 = vadd.f32 %v1963_v14, %v1955_v62 }
0x1832   :  { %3113 = vtanh.f32 %v1965_v15 }
0x1833   :  { %v505_v18 = vpop.permute.xlu0 %504 }
0x1834   :  { %507 = vst.msk [vmem:[#allocation7] sm:$0xff] %vm102_vm0, %v505_v18 }
0x1837   :  { %v924_v12 = vpop.permute.xlu0 %923 }
0x1838   :  { %927 = vst.msk [vmem:[#allocation7 + $0x10] sm:$0xff] %vm102_vm0, %v924_v12 }
0x183b   :  { %v1344_v19 = vpop.permute.xlu0 %1343  ;;  %v1990_v21 = vld [vmem:[#allocation7] sm:$0xff] }
0x183c   :  { %v3114_v22 = vpop.eup %3113  ;;  %1347 = vst.msk [vmem:[#allocation7 + $0x20] sm:$0xff] %vm102_vm0, %v1344_v19  ;;  %2781 = vmatprep.mubr.msk.f32.mxu0 %vm102_vm0, %v1990_v21 }
0x183d   :  { %1968 = vrot.lane.b32.xlu1 %v3114_v22, %s3281_s20 }
0x183f   :  { %v1764_v23 = vpop.permute.xlu0 %1763 }
0x1840   :  { %1767 = vst.msk [vmem:[#allocation7 + $0x30] sm:$0xff] %vm102_vm0, %v1764_v23 }
0x1841   :  { %713 = vrot.lane.b32.xlu1 %v3611_v25, %s3282_s21 }
0x1843   :  { %v1981_v1 = vpop.permute.xlu0 %1980  ;;  %v1994_v56 = vld [vmem:[#allocation7 + $0x20] sm:$0xff] }
0x1844   :  { %1983 = vst.msk [vmem:[#allocation3] sm:$0xff] %vm102_vm0, %v1981_v1 }
0x1845   :  { %1133 = vrot.lane.b32.xlu1 %v3694_v52, %s3282_s21  ;;  %v1992_v52 = vld [vmem:[#allocation7 + $0x10] sm:$0xff] }
0x1847   :  { %v1996_v44 = vld [vmem:[#allocation7 + $0x30] sm:$0xff] }
0x1849   :  { %1553 = vrot.lane.b32.xlu1 %v3769_v20, %s3282_s21 }
0x18af   :  { %v1969_v34 = vpop.permute.xlu1 %1968 }
0x18b0   :  { %v1971_v24 = vmul.f32 %v3112_v7, %v1969_v34  ;;  %v2365_v7 = vld [vmem:[%s3885_s9] ss:$0 sm:$0xff]  ;;  %s2299_s9 = sshll.u32 %s3284_s15, 4  ;;  %s2300_s9 = int_to_ptr.vmem [resolvable:$true] %s2299_s9 }
0x18b1   :  { %s3241_s17 = scalar_lea.vmem %s2300_s9, 1024  ;;  %p3246_p13 = scmp.lt.s32.totalorder %s2300_s9, %s2300_s9 }
0x18b2   :  { %1973 = vrot.lane.b32.xlu1 %v1971_v24, %s3282_s21  ;;  %p3242_p12 = scmp.ne.s32.totalorder %s2300_s9, %s3241_s17  ;;  %p3247_p0 = scmp.lt.s32.totalorder %s3241_s17, %s3241_s17 }
0x18b3   :  { %v714_v26 = vpop.permute.xlu1 %713 }
0x18b4   :  { %717 = vst.msk [vmem:[#allocation7 + $0x8] sm:$0xff] %vm102_vm0, %v714_v26  ;;  %p3248_p1 = por %p3247_p0, %p3246_p13 }
0x18b6   :  { %1986 = vrot.lane.b32.xlu1 %v1965_v15, %s3283_s0  ;;  %p3249_p2 = pnand %p3248_p1, %p3242_p12 }
0x18b7   :  { %v1134_v39 = vpop.permute.xlu1 %1133 }
0x18b8   :  { %1137 = vst.msk [vmem:[#allocation7 + $0x18] sm:$0xff] %vm102_vm0, %v1134_v39 }
0x18bb   :  { %v1554_v25 = vpop.permute.xlu1 %1553  ;;  %v1991_v27 = vld [vmem:[#allocation7 + $0x8] sm:$0xff] }
0x18bc   :  { %1557 = vst.msk [vmem:[#allocation7 + $0x28] sm:$0xff] %vm102_vm0, %v1554_v25  ;;  %2782 = vmatmul.mubr.msk.f32.vlgmr.msra.gmra.mrb[24].mxu0 %vm102_vm0, %v1991_v27 }
0x18bd   :  { %2784 = vmatprep.mubr.msk.f32.mxu0 %vm102_vm0, %v1992_v52 }
0x18bf   :  { %v1993_v20 = vld [vmem:[#allocation7 + $0x18] sm:$0xff] }
0x18c0   :  { %2785 = vmatmul.mubr.msk.f32.gmra.mrb[26].mxu0 %vm102_vm0, %v1993_v20 }
0x18c1   :  { %2787 = vmatprep.mubr.msk.f32.mxu0 %vm102_vm0, %v1994_v56 }
0x18c3   :  { %v1995_v28 = vld [vmem:[#allocation7 + $0x28] sm:$0xff] }
0x18c4   :  { %2788 = vmatmul.mubr.msk.f32.gmra.mrb[28].mxu0 %vm102_vm0, %v1995_v28 }
0x18c5   :  { %2790 = vmatprep.mubr.msk.f32.mxu0 %vm102_vm0, %v1996_v44 }
0x1924   :  { %v1974_v32 = vpop.permute.xlu1 %1973 }
0x1925   :  { %1977 = vst.msk [vmem:[#allocation7 + $0x38] sm:$0xff] %vm102_vm0, %v1974_v32  ;;  %1984 = vst.msk [vmem:[#allocation4] sm:$0xff] %vm102_vm0, %v1974_v32 }
0x1928   :  { %v1987_v33 = vpop.permute.xlu1 %1986 }
0x1929   :  { %1989 = vst.msk [vmem:[#allocation5] sm:$0xff] %vm102_vm0, %v1987_v33 }
0x192c   :  { %v1997_v35 = vld [vmem:[#allocation7 + $0x38] sm:$0xff] }
0x192d   :  { %2791 = vmatmul.mubr.msk.f32.gmra.mrb[30].mxu0 %vm102_vm0, %v1997_v35 }
0x198f   :  { %v2783_v40 = vpop.f32.mrb[24].mxu0 }
0x1990   :  { %v2105_v41 = vadd.f32 %v2783_v40, %v2356_v36  ;;  %v2099_v30 = vpop.f32.mrb[25].mxu0 }
0x1991   :  { %v2100_v42 = vadd.f32 %v2356_v36, %v2099_v30 }
0x1993   :  { %3115 = vtanh.f32 %v2100_v42  ;;  %v2786_v53 = vpop.f32.mrb[26].mxu0 }
0x1994   :  { %3117 = vtanh.f32 %v2105_v41  ;;  %v2115_v5 = vadd.f32 %v2786_v53, %v2356_v36  ;;  %v2109_v43 = vpop.f32.mrb[27].mxu0 }
0x1995   :  { %v2110_v45 = vadd.f32 %v2356_v36, %v2109_v43 }
0x1997   :  { %3119 = vtanh.f32 %v2110_v45  ;;  %v2789_v46 = vpop.f32.mrb[28].mxu0 }
0x1998   :  { %3121 = vtanh.f32 %v2115_v5  ;;  %v2125_v47 = vadd.f32 %v2789_v46, %v2356_v36  ;;  %v2119_v48 = vpop.f32.mrb[29].mxu0 }
0x1999   :  { %v2120_v10 = vadd.f32 %v2356_v36, %v2119_v48 }
0x199b   :  { %3123 = vtanh.f32 %v2120_v10 }
0x199c   :  { %3125 = vtanh.f32 %v2125_v47 }
0x199d   :  { %v3116_v50 = vpop.eup %3115 }
0x199e   :  { %v3118_v51 = vpop.eup %3117  ;;  %2801 = vmatprep.mubr.msk.f32.mxu1 %vm102_vm0, %v3116_v50 }
0x199f   :  { %2802 = vmatmul.mubr.msk.f32.vlgmr.msra.gmra.mrb[16].mxu1 %vm102_vm0, %v3118_v51 }
0x19a1   :  { %v3120_v58 = vpop.eup %3119 }
0x19a2   :  { %v3122_v59 = vpop.eup %3121  ;;  %2804 = vmatprep.mubr.msk.f32.mxu1 %vm102_vm0, %v3120_v58 }
0x19a3   :  { %2805 = vmatmul.mubr.msk.f32.gmra.mrb[18].mxu1 %vm102_vm0, %v3122_v59 }
0x19a5   :  { %v3124_v60 = vpop.eup %3123 }
0x19a6   :  { %v3126_v61 = vpop.eup %3125  ;;  %2807 = vmatprep.mubr.msk.f32.mxu1 %vm102_vm0, %v3124_v60 }
0x19a7   :  { %2808 = vmatmul.mubr.msk.f32.gmra.mrb[20].mxu1 %vm102_vm0, %v3126_v61 }
0x1a00   :  { %v2792_v63 = vpop.f32.mrb[30].mxu0 }
0x1a01   :  { %v2135_v54 = vadd.f32 %v2792_v63, %v2356_v36  ;;  %v2129_v2 = vpop.f32.mrb[31].mxu0 }
0x1a02   :  { %v2130_v3 = vadd.f32 %v2356_v36, %v2129_v2 }
0x1a04   :  { %3127 = vtanh.f32 %v2130_v3 }
0x1a05   :  { %3129 = vtanh.f32 %v2135_v54 }
0x1a0e   :  { %v3128_v4 = vpop.eup %3127 }
0x1a0f   :  { %v3130_v6 = vpop.eup %3129  ;;  %2810 = vmatprep.mubr.msk.f32.mxu1 %vm102_vm0, %v3128_v4 }
0x1a10   :  { %2811 = vmatmul.mubr.msk.f32.gmra.mrb[22].mxu1 %vm102_vm0, %v3130_v6 }
0x1a72   :  { %v2803_v8 = vpop.f32.mrb[16].mxu1 }
0x1a73   :  { %v2253_v9 = vadd.f32 %v2803_v8, %v2365_v7  ;;  %v2247_v62 = vpop.f32.mrb[17].mxu1 }
0x1a74   :  { %v2248_v14 = vadd.f32 %v2365_v7, %v2247_v62 }
0x1a75   :  { %2287 = vst [vmem:[#allocation17 + $0x8] sm:$0xff] %v2253_v9 }
0x1a76   :  { %2286 = vst [vmem:[#allocation17] sm:$0xff] %v2248_v14  ;;  %v2806_v15 = vpop.f32.mrb[18].mxu1 }
0x1a77   :  { %v2263_v55 = vadd.f32 %v2806_v15, %v2365_v7  ;;  %v2257_v16 = vpop.f32.mrb[19].mxu1 }
0x1a78   :  { %v2258_v17 = vadd.f32 %v2365_v7, %v2257_v16 }
0x1a79   :  { %2289 = vst [vmem:[#allocation17 + $0x18] sm:$0xff] %v2263_v55 }
0x1a7a   :  { %2288 = vst [vmem:[#allocation17 + $0x10] sm:$0xff] %v2258_v17  ;;  %v2809_v18 = vpop.f32.mrb[20].mxu1 }
0x1a7b   :  { %v2273_v38 = vadd.f32 %v2809_v18, %v2365_v7  ;;  %v2267_v11 = vpop.f32.mrb[21].mxu1 }
0x1a7c   :  { %v2268_v37 = vadd.f32 %v2365_v7, %v2267_v11 }
0x1a7d   :  { %2291 = vst [vmem:[#allocation17 + $0x28] sm:$0xff] %v2273_v38 }
0x1a7e   :  { %2290 = vst [vmem:[#allocation17 + $0x20] sm:$0xff] %v2268_v37 }
0x1ae3   :  { %v2812_v12 = vpop.f32.mrb[22].mxu1 }
0x1ae4   :  { %v2283_v19 = vadd.f32 %v2812_v12, %v2365_v7  ;;  %v2277_v21 = vpop.f32.mrb[23].mxu1 }
0x1ae5   :  { %v2278_v22 = vadd.f32 %v2365_v7, %v2277_v21 }
0x1ae6   :  { %2293 = vst [vmem:[#allocation17 + $0x38] sm:$0xff] %v2283_v19 }
0x1ae7   :  { %2292 = vst [vmem:[#allocation17 + $0x30] sm:$0xff] %v2278_v22 }
0x1ae8   :  { %3252 = shalt.err (!%p3249_p2)
}
0x1ae9   :  { %s3253_s7 = scalar_lea.hbm %s3886_s10, 1024 }
0x1aea   :  { %p3254_p3 = scmp.ne.s32.totalorder %s3886_s10, %s3253_s7  ;;  %p3257_p4 = scmp.lt.u32.totalorder %s3253_s7, %s3886_s10 }
0x1aec   :  { %p3259_p5 = pnand %p3257_p4, %p3254_p3 }
0x1aee   :  { %3262 = shalt.err (!%p3259_p5)
}
0x1aef   :  { %2305 = dma.vmem_to_hbm [thread:$0]  %s2300_s9, 1024, %s3886_s10, [#allocation10], %s3272_s23, %s3272_s23, %s3273_s24  }
0x1af0   :  { %3269 = dma.done.wait [#allocation10], 1024  }
0x1af1   :  { %3270 = vsyncadd [#allocation10], 4294966272 }
0x1af2   :  { %2309 = vsyncpa [#allocation9], 1 }
0x1af3   :  { %2310 = vsyncpa [#allocation12], 1 }
0x1af4   :  { %2311 = vsyncpa [#allocation15], 1 }
0x1af5   :  { %2312 = vsyncpa [#allocation10], 1 }

</bundles_post_ra>
